<compile_context>
chip_gen: v7x
topology: tpu7x:2x2x1
jax: 0.10.0
libtpu: 0.0.40
codegen_flags: <defaults>
</compile_context>

<pallas_src>
import functools
import math

import jax
import jax.numpy as jnp
from jax.experimental import pallas as pl
from jax.experimental.pallas import tpu as pltpu

CFG = dict(vocab=100, hidden=32, layers=2, heads=4, inter=64,
           max_pos=16, type_vocab=2, num_classes=3)


# ------------------------------ in-kernel helpers ----------------------------

def _gelu(y):
    # TODO(synk): HF BERT uses exact erf-GELU; tanh approximation used here for
    # guaranteed Mosaic lowering (EUP tanh).
    return 0.5 * y * (1.0 + jnp.tanh(0.7978845608028654 * (y + 0.044715 * y * y * y)))


def _layer_norm(x, g, b):
    mu = jnp.mean(x, axis=-1, keepdims=True)
    var = jnp.mean((x - mu) ** 2, axis=-1, keepdims=True)
    return (x - mu) * jax.lax.rsqrt(var + 1e-12) * g + b   # BERT eps=1e-12, biased var


# -------------------- fused encoder + pooler + classifier kernel -------------

def _make_encoder_kernel(cfg, bb, S):
    """bb = rows per batch block (first bb//2 rows are x_i, last bb//2 are x_j)."""
    H, nh = cfg["hidden"], cfg["heads"]
    C = cfg["num_classes"]
    dh = H // nh
    M = bb * S
    b2 = bb // 2
    bf16 = jnp.bfloat16
    f32 = jnp.float32

    def kernel(emb_ref, bias_ref,
               eg_ref, eb_ref,
               wqkv_ref, bqkv_ref, wo_ref, bo_ref, ln1g_ref, ln1b_ref,
               wi_ref, bi_ref, wf_ref, bf_ref, ln2g_ref, ln2b_ref,
               poolw_ref, poolb_ref, fcw_ref, fcb_ref,
               logits_ref, h_ref):
        layer = pl.program_id(1)

        # --- embedding LayerNorm only on the first layer step of each block ---
        @pl.when(layer == 0)
        def _():
            h_ref[...] = _layer_norm(emb_ref[...].reshape(M, H), eg_ref[...], eb_ref[...])

        h = h_ref[...]                                           # (M, H) f32

        # additive attention-mask bias, broadcast across heads ONCE per layer
        bias_all = jnp.concatenate([bias_ref[...]] * nh, axis=0)  # (nh*bb, 1, S)

        # ---- attention: fused QKV (softmax scale pre-folded into Q columns) ----
        qkv = jnp.dot(h.astype(bf16), wqkv_ref[0],
                      preferred_element_type=f32) + bqkv_ref[0]   # (M, 3H)

        def split_heads(x):                                       # (M, H) -> (nh*bb, S, dh)
            x3 = x.reshape(bb, S, H)
            return jnp.concatenate(
                [x3[:, :, i * dh:(i + 1) * dh] for i in range(nh)], axis=0)

        q = split_heads(qkv[:, 0:H]).astype(bf16)
        k = split_heads(qkv[:, H:2 * H]).astype(bf16)
        v = split_heads(qkv[:, 2 * H:3 * H]).astype(bf16)

        # all heads in one batched einsum (head axis merged into the batch dim)
        s = jnp.einsum("bqd,bkd->bqk", q, k,
                       preferred_element_type=f32) + bias_all     # (nh*bb, S, S)
        s = s - jnp.max(s, axis=-1, keepdims=True)
        p = jnp.exp(s)
        p = p * pl.reciprocal(jnp.sum(p, axis=-1, keepdims=True), approx=True)
        ctx = jnp.einsum("bqk,bkd->bqd", p.astype(bf16), v,
                         preferred_element_type=f32)              # (nh*bb, S, dh)

        # merge heads back to (M, H): ONE output-projection matmul
        ctx_m = jnp.concatenate(
            [ctx[i * bb:(i + 1) * bb].reshape(M, dh) for i in range(nh)], axis=-1)
        attn = jnp.dot(ctx_m.astype(bf16), wo_ref[0],
                       preferred_element_type=f32) + bo_ref[0]
        h = _layer_norm(h + attn, ln1g_ref[0], ln1b_ref[0])

        # ---- feed-forward ----
        inter = _gelu(jnp.dot(h.astype(bf16), wi_ref[0],
                              preferred_element_type=f32) + bi_ref[0])
        ff = jnp.dot(inter.astype(bf16), wf_ref[0],
                     preferred_element_type=f32) + bf_ref[0]
        h = _layer_norm(h + ff, ln2g_ref[0], ln2b_ref[0])
        h_ref[...] = h

        # ---- pooler + pair classifier fused onto the last layer step ----
        @pl.when(layer == pl.num_programs(1) - 1)
        def _():
            cls = h.reshape(bb, S, H)[:, 0, :]                    # (bb, H) CLS tokens
            pooled = jnp.tanh(jnp.dot(cls.astype(bf16), poolw_ref[...],
                                      preferred_element_type=f32) + poolb_ref[...])
            # rows [0:b2] = x_i, [b2:bb] = x_j of this block:
            # torch.cat((cls_i, cls_j), 1) @ fc_w == cls_i @ fc_w[:H] + cls_j @ fc_w[H:]
            fcw = fcw_ref[...]
            logits = (jnp.dot(pooled[0:b2].astype(bf16), fcw[0:H],
                              preferred_element_type=f32)
                      + jnp.dot(pooled[b2:bb].astype(bf16), fcw[H:2 * H],
                                preferred_element_type=f32)
                      + fcb_ref[...])
            logits_ref[...] = logits[:, None, :]                  # (b2, 1, C)

    return kernel


def bert_encode_classify(p, ids, attn_mask, cfg, nblk):
    """ids/attn_mask: (2B, S), each grid block = [b2 x_i rows ; b2 x_j rows].
    Returns logits (B, num_classes)."""
    BT, S = ids.shape
    H, I, L, C = cfg["hidden"], cfg["inter"], cfg["layers"], cfg["num_classes"]
    bb = BT // nblk
    b2 = bb // 2
    B = BT // 2

    # embedding gather is host-side glue; its LayerNorm runs inside the kernel
    emb = (jnp.take(p["word_emb"], ids, axis=0)
           + p["pos_emb"][:S][None, :, :]
           + p["type_emb"][0][None, None, :]).astype(jnp.float32)
    bias = ((1.0 - attn_mask.astype(jnp.float32)) * -1e9).reshape(BT, 1, S)

    seq_spec = pl.BlockSpec((bb, S, H), lambda i, l: (i, 0, 0))
    bias_spec = pl.BlockSpec((bb, 1, S), lambda i, l: (i, 0, 0))

    # TODO(synk): on v7x, pipeline_mode=pl.Buffered(1) on the grid-invariant
    # specs below halves their VMEM footprint (irrelevant at these toy shapes).
    def const2(shape):                       # grid-invariant (stays VMEM-resident)
        return pl.BlockSpec(shape, lambda i, l: (0, 0))

    def per_layer(shape):                    # streamed one layer at a time
        return pl.BlockSpec((1,) + shape, lambda i, l: (l, 0, 0))

    in_specs = [
        seq_spec, bias_spec,
        const2((1, H)), const2((1, H)),                       # embedding LN
        per_layer((H, 3 * H)), per_layer((1, 3 * H)),         # fused QKV (scale folded)
        per_layer((H, H)), per_layer((1, H)),                 # attention output proj
        per_layer((1, H)), per_layer((1, H)),                 # LN1
        per_layer((H, I)), per_layer((1, I)),                 # FFN intermediate
        per_layer((I, H)), per_layer((1, H)),                 # FFN output
        per_layer((1, H)), per_layer((1, H)),                 # LN2
        const2((H, H)), const2((1, H)),                       # pooler
        const2((2 * H, C)), const2((1, C)),                   # classifier
    ]

    logits = pl.pallas_call(
        _make_encoder_kernel(cfg, bb, S),
        out_shape=jax.ShapeDtypeStruct((B, 1, C), jnp.float32),
        grid=(nblk, L),                                        # layers streamed (inner axis)
        in_specs=in_specs,
        out_specs=pl.BlockSpec((b2, 1, C), lambda i, l: (i, 0, 0)),
        scratch_shapes=[pltpu.VMEM((bb * S, H), jnp.float32)], # hidden-state carry
        compiler_params=pltpu.CompilerParams(
            dimension_semantics=("parallel", "arbitrary")),
    )(emb, bias,
      p["emb_ln_g"], p["emb_ln_b"],
      p["wqkv"], p["bqkv"], p["wo"], p["bo"], p["ln1_g"], p["ln1_b"],
      p["wi"], p["bi"], p["wf"], p["bf"], p["ln2_g"], p["ln2_b"],
      p["pool_w"], p["pool_b"], p["fc_w"], p["fc_b"])
    return logits.reshape(B, C)


# --------------------------- parameters (synthetic) ---------------------------

def init_params(key, cfg):
    def nrm(k, shape):
        return 0.02 * jax.random.normal(k, shape, jnp.float32)

    keys = iter(jax.random.split(key, 64))
    H, I, L, C = cfg["hidden"], cfg["inter"], cfg["layers"], cfg["num_classes"]
    scale = 1.0 / math.sqrt(H // cfg["heads"])
    bf16 = jnp.bfloat16

    # fused QKV with the softmax scale folded into the Q columns (free at init)
    wq = nrm(next(keys), (L, H, H)) * scale
    wk = nrm(next(keys), (L, H, H))
    wv = nrm(next(keys), (L, H, H))

    return {
        "word_emb": nrm(next(keys), (cfg["vocab"], H)),
        "pos_emb": nrm(next(keys), (cfg["max_pos"], H)),
        "type_emb": nrm(next(keys), (cfg["type_vocab"], H)),
        "emb_ln_g": jnp.ones((1, H), jnp.float32),
        "emb_ln_b": jnp.zeros((1, H), jnp.float32),
        # per-layer weights stacked on a leading L axis; matmul weights in bf16
        "wqkv": jnp.concatenate([wq, wk, wv], axis=-1).astype(bf16),   # (L, H, 3H)
        "bqkv": jnp.zeros((L, 1, 3 * H), jnp.float32),
        "wo": nrm(next(keys), (L, H, H)).astype(bf16),
        "bo": jnp.zeros((L, 1, H), jnp.float32),
        "ln1_g": jnp.ones((L, 1, H), jnp.float32),
        "ln1_b": jnp.zeros((L, 1, H), jnp.float32),
        "wi": nrm(next(keys), (L, H, I)).astype(bf16),
        "bi": jnp.zeros((L, 1, I), jnp.float32),
        "wf": nrm(next(keys), (L, I, H)).astype(bf16),
        "bf": jnp.zeros((L, 1, H), jnp.float32),
        "ln2_g": jnp.ones((L, 1, H), jnp.float32),
        "ln2_b": jnp.zeros((L, 1, H), jnp.float32),
        "pool_w": nrm(next(keys), (H, H)).astype(bf16),
        "pool_b": jnp.zeros((1, H), jnp.float32),
        "fc_w": nrm(next(keys), (2 * H, C)).astype(bf16),    # nn.Linear(768*2, C) analog
        "fc_b": jnp.zeros((1, C), jnp.float32),
    }


# ------------------------------- forward pass ---------------------------------

def bert_classifier_forward(p, x_i, x_j, attention_mask, cfg, nblk):
    B, S = x_i.shape
    b2 = B // nblk
    # each grid block holds b2 x_i rows followed by their matching b2 x_j rows,
    # so the [CLS_i ; CLS_j] concat + classifier can run inside the same kernel.
    ids = jnp.concatenate([x_i.reshape(nblk, b2, S), x_j.reshape(nblk, b2, S)],
                          axis=1).reshape(2 * B, S)
    m3 = attention_mask.reshape(nblk, b2, S)
    msk = jnp.concatenate([m3, m3], axis=1).reshape(2 * B, S)
    return bert_encode_classify(p, ids, msk, cfg, nblk)


# ----------------------------------- main --------------------------------------

if __name__ == "__main__":
    cfg = CFG
    key = jax.random.PRNGKey(0)
    kp, ki, kj = jax.random.split(key, 3)
    params = init_params(kp, cfg)

    B, S = 2, 8
    x_i = jax.random.randint(ki, (B, S), 0, cfg["vocab"], dtype=jnp.int32)
    x_j = jax.random.randint(kj, (B, S), 0, cfg["vocab"], dtype=jnp.int32)
    attention_mask = jnp.ones((B, S), jnp.int32).at[1, 6:].set(0)

    # batch-block count keyed off TensorCores per device: 1 on v5e/v6e (single TC),
    # >1 only where megacore parallelism exists and whole pairs fit per block.
    dev = jax.devices()[0]
    num_tc = getattr(dev, "num_cores", None) or getattr(dev, "core_count", None) or 1
    nblk = num_tc if (num_tc > 1 and B % num_tc == 0) else 1

    # whole forward (concat, embedding gather, mask math, fused kernel) under one jit
    fwd = jax.jit(functools.partial(bert_classifier_forward, cfg=cfg, nblk=nblk))
    logits = fwd(params, x_i, x_j, attention_mask)
    jax.block_until_ready(logits)

    assert logits.shape == (B, cfg["num_classes"]), logits.shape
    assert bool(jnp.all(jnp.isfinite(logits)))
    print("KERNEL_OK")
</pallas_src>

<mosaic_0001>
module attributes {stable_mosaic.version = 11 : i64} {
  func.func @kernel(%arg0: i32, %arg1: i32, %arg2: memref<4x8x32xf32, #tpu.memory_space<vmem>>, %arg3: memref<4x1x8xf32, #tpu.memory_space<vmem>>, %arg4: memref<1x32xf32, #tpu.memory_space<vmem>>, %arg5: memref<1x32xf32, #tpu.memory_space<vmem>>, %arg6: memref<1x32x96xbf16, #tpu.memory_space<vmem>>, %arg7: memref<1x1x96xf32, #tpu.memory_space<vmem>>, %arg8: memref<1x32x32xbf16, #tpu.memory_space<vmem>>, %arg9: memref<1x1x32xf32, #tpu.memory_space<vmem>>, %arg10: memref<1x1x32xf32, #tpu.memory_space<vmem>>, %arg11: memref<1x1x32xf32, #tpu.memory_space<vmem>>, %arg12: memref<1x32x64xbf16, #tpu.memory_space<vmem>>, %arg13: memref<1x1x64xf32, #tpu.memory_space<vmem>>, %arg14: memref<1x64x32xbf16, #tpu.memory_space<vmem>>, %arg15: memref<1x1x32xf32, #tpu.memory_space<vmem>>, %arg16: memref<1x1x32xf32, #tpu.memory_space<vmem>>, %arg17: memref<1x1x32xf32, #tpu.memory_space<vmem>>, %arg18: memref<32x32xbf16, #tpu.memory_space<vmem>>, %arg19: memref<1x32xf32, #tpu.memory_space<vmem>>, %arg20: memref<64x3xbf16, #tpu.memory_space<vmem>>, %arg21: memref<1x3xf32, #tpu.memory_space<vmem>>, %arg22: memref<2x1x3xf32, #tpu.memory_space<vmem>>, %arg23: memref<32x32xf32, #tpu.memory_space<vmem>>) attributes {dimension_semantics = [#tpu.dimension_semantics<parallel>, #tpu.dimension_semantics<arbitrary>], iteration_bounds = array<i64: 1, 2>, scalar_prefetch = 0 : i64, scratch_operands = 1 : i64, tpu.core_type = #tpu.core_type<tc>, window_params = [{transform_indices = @transform_0, window_bounds = array<i64: 4, 8, 32>}, {transform_indices = @transform_1, window_bounds = array<i64: 4, 1, 8>}, {pipeline_mode = #tpu.pipeline_mode<synchronous>, transform_indices = @transform_2, window_bounds = array<i64: 1, 32>}, {pipeline_mode = #tpu.pipeline_mode<synchronous>, transform_indices = @transform_3, window_bounds = array<i64: 1, 32>}, {transform_indices = @transform_4, window_bounds = array<i64: 1, 32, 96>}, {transform_indices = @transform_5, window_bounds = array<i64: 1, 1, 96>}, {transform_indices = @transform_6, window_bounds = array<i64: 1, 32, 32>}, {transform_indices = @transform_7, window_bounds = array<i64: 1, 1, 32>}, {transform_indices = @transform_8, window_bounds = array<i64: 1, 1, 32>}, {transform_indices = @transform_9, window_bounds = array<i64: 1, 1, 32>}, {transform_indices = @transform_10, window_bounds = array<i64: 1, 32, 64>}, {transform_indices = @transform_11, window_bounds = array<i64: 1, 1, 64>}, {transform_indices = @transform_12, window_bounds = array<i64: 1, 64, 32>}, {transform_indices = @transform_13, window_bounds = array<i64: 1, 1, 32>}, {transform_indices = @transform_14, window_bounds = array<i64: 1, 1, 32>}, {transform_indices = @transform_15, window_bounds = array<i64: 1, 1, 32>}, {pipeline_mode = #tpu.pipeline_mode<synchronous>, transform_indices = @transform_16, window_bounds = array<i64: 32, 32>}, {pipeline_mode = #tpu.pipeline_mode<synchronous>, transform_indices = @transform_17, window_bounds = array<i64: 1, 32>}, {pipeline_mode = #tpu.pipeline_mode<synchronous>, transform_indices = @transform_18, window_bounds = array<i64: 64, 3>}, {pipeline_mode = #tpu.pipeline_mode<synchronous>, transform_indices = @transform_19, window_bounds = array<i64: 1, 3>}, {transform_indices = @transform_20, window_bounds = array<i64: 2, 1, 3>}]} {
    %c0_i32 = arith.constant 0 : i32
    %0 = arith.cmpi eq, %arg1, %c0_i32 : i32
    %1 = arith.extui %0 : i1 to i32
    %c0_i32_0 = arith.constant 0 : i32
    %2 = arith.cmpi ne, %1, %c0_i32_0 : i32
    scf.if %2 {
      %c0_65 = arith.constant 0 : index
      %c0_66 = arith.constant 0 : index
      %c0_67 = arith.constant 0 : index
      %157 = vector.load %arg2[%c0_65, %c0_66, %c0_67] : memref<4x8x32xf32, #tpu.memory_space<vmem>>, vector<4x8x32xf32>
      %158 = vector.shape_cast %157 : vector<4x8x32xf32> to vector<32x32xf32>
      %c0_68 = arith.constant 0 : index
      %c0_69 = arith.constant 0 : index
      %159 = vector.load %arg4[%c0_68, %c0_69] : memref<1x32xf32, #tpu.memory_space<vmem>>, vector<1x32xf32>
      %c0_70 = arith.constant 0 : index
      %c0_71 = arith.constant 0 : index
      %160 = vector.load %arg5[%c0_70, %c0_71] : memref<1x32xf32, #tpu.memory_space<vmem>>, vector<1x32xf32>
      %cst_72 = arith.constant dense<0.000000e+00> : vector<32xf32>
      %161 = vector.multi_reduction <add>, %158, %cst_72 [1] : vector<32x32xf32> to vector<32xf32>
      %162 = vector.shape_cast %161 : vector<32xf32> to vector<32x1xf32>
      %cst_73 = arith.constant 3.200000e+01 : f32
      %163 = vector.broadcast %cst_73 : f32 to vector<32x1xf32>
      %164 = arith.divf %162, %163 : vector<32x1xf32>
      %165 = vector.broadcast %164 : vector<32x1xf32> to vector<32x32xf32>
      %166 = arith.subf %158, %165 : vector<32x32xf32>
      %167 = arith.mulf %166, %166 : vector<32x32xf32>
      %cst_74 = arith.constant dense<0.000000e+00> : vector<32xf32>
      %168 = vector.multi_reduction <add>, %167, %cst_74 [1] : vector<32x32xf32> to vector<32xf32>
      %169 = vector.shape_cast %168 : vector<32xf32> to vector<32x1xf32>
      %cst_75 = arith.constant 3.200000e+01 : f32
      %170 = vector.broadcast %cst_75 : f32 to vector<32x1xf32>
      %171 = arith.divf %169, %170 : vector<32x1xf32>
      %172 = vector.broadcast %164 : vector<32x1xf32> to vector<32x32xf32>
      %173 = arith.subf %158, %172 : vector<32x32xf32>
      %cst_76 = arith.constant 9.99999996E-13 : f32
      %174 = vector.broadcast %cst_76 : f32 to vector<32x1xf32>
      %175 = arith.addf %171, %174 : vector<32x1xf32>
      %176 = math.rsqrt %175 : vector<32x1xf32>
      %177 = vector.broadcast %176 : vector<32x1xf32> to vector<32x32xf32>
      %178 = arith.mulf %173, %177 : vector<32x32xf32>
      %179 = vector.broadcast %159 : vector<1x32xf32> to vector<32x32xf32>
      %180 = arith.mulf %178, %179 : vector<32x32xf32>
      %181 = vector.broadcast %160 : vector<1x32xf32> to vector<32x32xf32>
      %182 = arith.addf %180, %181 : vector<32x32xf32>
      %c0_77 = arith.constant 0 : index
      %c0_78 = arith.constant 0 : index
      %183 = vector.load %arg23[%c0_77, %c0_78] : memref<32x32xf32, #tpu.memory_space<vmem>>, vector<32x32xf32>
      tpu.vector_store %arg23[%c0_77, %c0_78], %182 {strides = array<i32>} : memref<32x32xf32, #tpu.memory_space<vmem>>, vector<32x32xf32>,
    } else {
    }
    %c0 = arith.constant 0 : index
    %c0_1 = arith.constant 0 : index
    %3 = vector.load %arg23[%c0, %c0_1] : memref<32x32xf32, #tpu.memory_space<vmem>>, vector<32x32xf32>
    %c0_2 = arith.constant 0 : index
    %c0_3 = arith.constant 0 : index
    %c0_4 = arith.constant 0 : index
    %4 = vector.load %arg3[%c0_2, %c0_3, %c0_4] : memref<4x1x8xf32, #tpu.memory_space<vmem>>, vector<4x1x8xf32>
    %5 = tpu.concatenate %4, %4, %4, %4 in 0 : vector<4x1x8xf32>, vector<4x1x8xf32>, vector<4x1x8xf32>, vector<4x1x8xf32> -> vector<16x1x8xf32>
    %6 = arith.truncf %3 : vector<32x32xf32> to vector<32x32xbf16>
    %c0_5 = arith.constant 0 : index
    %c0_6 = arith.constant 0 : index
    %c0_7 = arith.constant 0 : index
    %7 = vector.load %arg6[%c0_5, %c0_6, %c0_7] : memref<1x32x96xbf16, #tpu.memory_space<vmem>>, vector<1x32x96xbf16>
    %8 = vector.shape_cast %7 : vector<1x32x96xbf16> to vector<32x96xbf16>
    %cst = arith.constant dense<0.000000e+00> : vector<32x96xf32>
    %9 = tpu.matmul %6, %8, %cst {dimension_numbers = #tpu.dot_dimension_numbers<[1], [0], [0], [1], [0, 0, 1, 1], [], []>} : vector<32x32xbf16>, vector<32x96xbf16>, vector<32x96xf32> -> vector<32x96xf32>
    %c0_8 = arith.constant 0 : index
    %c0_9 = arith.constant 0 : index
    %c0_10 = arith.constant 0 : index
    %10 = vector.load %arg7[%c0_8, %c0_9, %c0_10] : memref<1x1x96xf32, #tpu.memory_space<vmem>>, vector<1x1x96xf32>
    %11 = vector.shape_cast %10 : vector<1x1x96xf32> to vector<1x96xf32>
    %12 = vector.broadcast %11 : vector<1x96xf32> to vector<32x96xf32>
    %13 = arith.addf %9, %12 : vector<32x96xf32>
    %14 = vector.extract_strided_slice %13 {offsets = [0, 0], sizes = [32, 32], strides = [1, 1]} : vector<32x96xf32> to vector<32x32xf32>
    %15 = vector.shape_cast %14 : vector<32x32xf32> to vector<4x8x32xf32>
    %16 = vector.extract_strided_slice %15 {offsets = [0, 0, 0], sizes = [4, 8, 8], strides = [1, 1, 1]} : vector<4x8x32xf32> to vector<4x8x8xf32>
    %17 = vector.extract_strided_slice %15 {offsets = [0, 0, 8], sizes = [4, 8, 8], strides = [1, 1, 1]} : vector<4x8x32xf32> to vector<4x8x8xf32>
    %18 = vector.extract_strided_slice %15 {offsets = [0, 0, 16], sizes = [4, 8, 8], strides = [1, 1, 1]} : vector<4x8x32xf32> to vector<4x8x8xf32>
    %19 = vector.extract_strided_slice %15 {offsets = [0, 0, 24], sizes = [4, 8, 8], strides = [1, 1, 1]} : vector<4x8x32xf32> to vector<4x8x8xf32>
    %20 = tpu.concatenate %16, %17, %18, %19 in 0 : vector<4x8x8xf32>, vector<4x8x8xf32>, vector<4x8x8xf32>, vector<4x8x8xf32> -> vector<16x8x8xf32>
    %21 = arith.truncf %20 : vector<16x8x8xf32> to vector<16x8x8xbf16>
    %22 = vector.extract_strided_slice %13 {offsets = [0, 32], sizes = [32, 32], strides = [1, 1]} : vector<32x96xf32> to vector<32x32xf32>
    %23 = vector.shape_cast %22 : vector<32x32xf32> to vector<4x8x32xf32>
    %24 = vector.extract_strided_slice %23 {offsets = [0, 0, 0], sizes = [4, 8, 8], strides = [1, 1, 1]} : vector<4x8x32xf32> to vector<4x8x8xf32>
    %25 = vector.extract_strided_slice %23 {offsets = [0, 0, 8], sizes = [4, 8, 8], strides = [1, 1, 1]} : vector<4x8x32xf32> to vector<4x8x8xf32>
    %26 = vector.extract_strided_slice %23 {offsets = [0, 0, 16], sizes = [4, 8, 8], strides = [1, 1, 1]} : vector<4x8x32xf32> to vector<4x8x8xf32>
    %27 = vector.extract_strided_slice %23 {offsets = [0, 0, 24], sizes = [4, 8, 8], strides = [1, 1, 1]} : vector<4x8x32xf32> to vector<4x8x8xf32>
    %28 = tpu.concatenate %24, %25, %26, %27 in 0 : vector<4x8x8xf32>, vector<4x8x8xf32>, vector<4x8x8xf32>, vector<4x8x8xf32> -> vector<16x8x8xf32>
    %29 = arith.truncf %28 : vector<16x8x8xf32> to vector<16x8x8xbf16>
    %30 = vector.extract_strided_slice %13 {offsets = [0, 64], sizes = [32, 32], strides = [1, 1]} : vector<32x96xf32> to vector<32x32xf32>
    %31 = vector.shape_cast %30 : vector<32x32xf32> to vector<4x8x32xf32>
    %32 = vector.extract_strided_slice %31 {offsets = [0, 0, 0], sizes = [4, 8, 8], strides = [1, 1, 1]} : vector<4x8x32xf32> to vector<4x8x8xf32>
    %33 = vector.extract_strided_slice %31 {offsets = [0, 0, 8], sizes = [4, 8, 8], strides = [1, 1, 1]} : vector<4x8x32xf32> to vector<4x8x8xf32>
    %34 = vector.extract_strided_slice %31 {offsets = [0, 0, 16], sizes = [4, 8, 8], strides = [1, 1, 1]} : vector<4x8x32xf32> to vector<4x8x8xf32>
    %35 = vector.extract_strided_slice %31 {offsets = [0, 0, 24], sizes = [4, 8, 8], strides = [1, 1, 1]} : vector<4x8x32xf32> to vector<4x8x8xf32>
    %36 = tpu.concatenate %32, %33, %34, %35 in 0 : vector<4x8x8xf32>, vector<4x8x8xf32>, vector<4x8x8xf32>, vector<4x8x8xf32> -> vector<16x8x8xf32>
    %37 = arith.truncf %36 : vector<16x8x8xf32> to vector<16x8x8xbf16>
    "tpu.trace_start"() <{level = 10 : i32, message = "bqd,bkd->bqk"}> : () -> ()
    %cst_11 = arith.constant dense<0.000000e+00> : vector<16x8x8xf32>
    %38 = tpu.matmul %21, %29, %cst_11 {dimension_numbers = #tpu.dot_dimension_numbers<[2], [2], [1], [1], [0, 0, 0, 1, 1, 1], [0], [0]>} : vector<16x8x8xbf16>, vector<16x8x8xbf16>, vector<16x8x8xf32> -> vector<16x8x8xf32>
    "tpu.trace_stop"() : () -> ()
    %39 = vector.broadcast %5 : vector<16x1x8xf32> to vector<16x8x8xf32>
    %40 = arith.addf %38, %39 : vector<16x8x8xf32>
    %cst_12 = arith.constant dense<0xFF800000> : vector<16x8xf32>
    %41 = vector.multi_reduction <maximumf>, %40, %cst_12 [2] : vector<16x8x8xf32> to vector<16x8xf32>
    %42 = vector.shape_cast %41 : vector<16x8xf32> to vector<16x8x1xf32>
    %43 = vector.broadcast %42 : vector<16x8x1xf32> to vector<16x8x8xf32>
    %44 = arith.subf %40, %43 : vector<16x8x8xf32>
    %45 = math.exp %44 : vector<16x8x8xf32>
    %cst_13 = arith.constant dense<0.000000e+00> : vector<16x8xf32>
    %46 = vector.multi_reduction <add>, %45, %cst_13 [2] : vector<16x8x8xf32> to vector<16x8xf32>
    %47 = vector.shape_cast %46 : vector<16x8xf32> to vector<16x8x1xf32>
    %48 = tpu.reciprocal %47 {approx = true} : vector<16x8x1xf32> -> vector<16x8x1xf32>
    %49 = vector.broadcast %48 : vector<16x8x1xf32> to vector<16x8x8xf32>
    %50 = arith.mulf %45, %49 : vector<16x8x8xf32>
    %51 = arith.truncf %50 : vector<16x8x8xf32> to vector<16x8x8xbf16>
    "tpu.trace_start"() <{level = 10 : i32, message = "bqk,bkd->bqd"}> : () -> ()
    %cst_14 = arith.constant dense<0.000000e+00> : vector<16x8x8xf32>
    %52 = tpu.matmul %51, %37, %cst_14 {dimension_numbers = #tpu.dot_dimension_numbers<[2], [1], [1], [2], [0, 0, 0, 1, 1, 2], [0], [0]>} : vector<16x8x8xbf16>, vector<16x8x8xbf16>, vector<16x8x8xf32> -> vector<16x8x8xf32>
    "tpu.trace_stop"() : () -> ()
    %53 = vector.extract_strided_slice %52 {offsets = [0, 0, 0], sizes = [4, 8, 8], strides = [1, 1, 1]} : vector<16x8x8xf32> to vector<4x8x8xf32>
    %54 = vector.shape_cast %53 : vector<4x8x8xf32> to vector<32x8xf32>
    %55 = vector.extract_strided_slice %52 {offsets = [4, 0, 0], sizes = [4, 8, 8], strides = [1, 1, 1]} : vector<16x8x8xf32> to vector<4x8x8xf32>
    %56 = vector.shape_cast %55 : vector<4x8x8xf32> to vector<32x8xf32>
    %57 = vector.extract_strided_slice %52 {offsets = [8, 0, 0], sizes = [4, 8, 8], strides = [1, 1, 1]} : vector<16x8x8xf32> to vector<4x8x8xf32>
    %58 = vector.shape_cast %57 : vector<4x8x8xf32> to vector<32x8xf32>
    %59 = vector.extract_strided_slice %52 {offsets = [12, 0, 0], sizes = [4, 8, 8], strides = [1, 1, 1]} : vector<16x8x8xf32> to vector<4x8x8xf32>
    %60 = vector.shape_cast %59 : vector<4x8x8xf32> to vector<32x8xf32>
    %61 = tpu.concatenate %54, %56, %58, %60 in 1 : vector<32x8xf32>, vector<32x8xf32>, vector<32x8xf32>, vector<32x8xf32> -> vector<32x32xf32>
    %62 = arith.truncf %61 : vector<32x32xf32> to vector<32x32xbf16>
    %c0_15 = arith.constant 0 : index
    %c0_16 = arith.constant 0 : index
    %c0_17 = arith.constant 0 : index
    %63 = vector.load %arg8[%c0_15, %c0_16, %c0_17] : memref<1x32x32xbf16, #tpu.memory_space<vmem>>, vector<1x32x32xbf16>
    %64 = vector.shape_cast %63 : vector<1x32x32xbf16> to vector<32x32xbf16>
    %cst_18 = arith.constant dense<0.000000e+00> : vector<32x32xf32>
    %65 = tpu.matmul %62, %64, %cst_18 {dimension_numbers = #tpu.dot_dimension_numbers<[1], [0], [0], [1], [0, 0, 1, 1], [], []>} : vector<32x32xbf16>, vector<32x32xbf16>, vector<32x32xf32> -> vector<32x32xf32>
    %c0_19 = arith.constant 0 : index
    %c0_20 = arith.constant 0 : index
    %c0_21 = arith.constant 0 : index
    %66 = vector.load %arg9[%c0_19, %c0_20, %c0_21] : memref<1x1x32xf32, #tpu.memory_space<vmem>>, vector<1x1x32xf32>
    %67 = vector.shape_cast %66 : vector<1x1x32xf32> to vector<1x32xf32>
    %68 = vector.broadcast %67 : vector<1x32xf32> to vector<32x32xf32>
    %69 = arith.addf %65, %68 : vector<32x32xf32>
    %70 = arith.addf %3, %69 : vector<32x32xf32>
    %c0_22 = arith.constant 0 : index
    %c0_23 = arith.constant 0 : index
    %c0_24 = arith.constant 0 : index
    %71 = vector.load %arg10[%c0_22, %c0_23, %c0_24] : memref<1x1x32xf32, #tpu.memory_space<vmem>>, vector<1x1x32xf32>
    %72 = vector.shape_cast %71 : vector<1x1x32xf32> to vector<1x32xf32>
    %c0_25 = arith.constant 0 : index
    %c0_26 = arith.constant 0 : index
    %c0_27 = arith.constant 0 : index
    %73 = vector.load %arg11[%c0_25, %c0_26, %c0_27] : memref<1x1x32xf32, #tpu.memory_space<vmem>>, vector<1x1x32xf32>
    %74 = vector.shape_cast %73 : vector<1x1x32xf32> to vector<1x32xf32>
    %cst_28 = arith.constant dense<0.000000e+00> : vector<32xf32>
    %75 = vector.multi_reduction <add>, %70, %cst_28 [1] : vector<32x32xf32> to vector<32xf32>
    %76 = vector.shape_cast %75 : vector<32xf32> to vector<32x1xf32>
    %cst_29 = arith.constant 3.200000e+01 : f32
    %77 = vector.broadcast %cst_29 : f32 to vector<32x1xf32>
    %78 = arith.divf %76, %77 : vector<32x1xf32>
    %79 = vector.broadcast %78 : vector<32x1xf32> to vector<32x32xf32>
    %80 = arith.subf %70, %79 : vector<32x32xf32>
    %81 = arith.mulf %80, %80 : vector<32x32xf32>
    %cst_30 = arith.constant dense<0.000000e+00> : vector<32xf32>
    %82 = vector.multi_reduction <add>, %81, %cst_30 [1] : vector<32x32xf32> to vector<32xf32>
    %83 = vector.shape_cast %82 : vector<32xf32> to vector<32x1xf32>
    %cst_31 = arith.constant 3.200000e+01 : f32
    %84 = vector.broadcast %cst_31 : f32 to vector<32x1xf32>
    %85 = arith.divf %83, %84 : vector<32x1xf32>
    %86 = vector.broadcast %78 : vector<32x1xf32> to vector<32x32xf32>
    %87 = arith.subf %70, %86 : vector<32x32xf32>
    %cst_32 = arith.constant 9.99999996E-13 : f32
    %88 = vector.broadcast %cst_32 : f32 to vector<32x1xf32>
    %89 = arith.addf %85, %88 : vector<32x1xf32>
    %90 = math.rsqrt %89 : vector<32x1xf32>
    %91 = vector.broadcast %90 : vector<32x1xf32> to vector<32x32xf32>
    %92 = arith.mulf %87, %91 : vector<32x32xf32>
    %93 = vector.broadcast %72 : vector<1x32xf32> to vector<32x32xf32>
    %94 = arith.mulf %92, %93 : vector<32x32xf32>
    %95 = vector.broadcast %74 : vector<1x32xf32> to vector<32x32xf32>
    %96 = arith.addf %94, %95 : vector<32x32xf32>
    %97 = arith.truncf %96 : vector<32x32xf32> to vector<32x32xbf16>
    %c0_33 = arith.constant 0 : index
    %c0_34 = arith.constant 0 : index
    %c0_35 = arith.constant 0 : index
    %98 = vector.load %arg12[%c0_33, %c0_34, %c0_35] : memref<1x32x64xbf16, #tpu.memory_space<vmem>>, vector<1x32x64xbf16>
    %99 = vector.shape_cast %98 : vector<1x32x64xbf16> to vector<32x64xbf16>
    %cst_36 = arith.constant dense<0.000000e+00> : vector<32x64xf32>
    %100 = tpu.matmul %97, %99, %cst_36 {dimension_numbers = #tpu.dot_dimension_numbers<[1], [0], [0], [1], [0, 0, 1, 1], [], []>} : vector<32x32xbf16>, vector<32x64xbf16>, vector<32x64xf32> -> vector<32x64xf32>
    %c0_37 = arith.constant 0 : index
    %c0_38 = arith.constant 0 : index
    %c0_39 = arith.constant 0 : index
    %101 = vector.load %arg13[%c0_37, %c0_38, %c0_39] : memref<1x1x64xf32, #tpu.memory_space<vmem>>, vector<1x1x64xf32>
    %102 = vector.shape_cast %101 : vector<1x1x64xf32> to vector<1x64xf32>
    %103 = vector.broadcast %102 : vector<1x64xf32> to vector<32x64xf32>
    %104 = arith.addf %100, %103 : vector<32x64xf32>
    %cst_40 = arith.constant 5.000000e-01 : f32
    %105 = vector.broadcast %cst_40 : f32 to vector<32x64xf32>
    %106 = arith.mulf %105, %104 : vector<32x64xf32>
    %cst_41 = arith.constant 4.471500e-02 : f32
    %107 = vector.broadcast %cst_41 : f32 to vector<32x64xf32>
    %108 = arith.mulf %107, %104 : vector<32x64xf32>
    %109 = arith.mulf %108, %104 : vector<32x64xf32>
    %110 = arith.mulf %109, %104 : vector<32x64xf32>
    %111 = arith.addf %104, %110 : vector<32x64xf32>
    %cst_42 = arith.constant 0.797884583 : f32
    %112 = vector.broadcast %cst_42 : f32 to vector<32x64xf32>
    %113 = arith.mulf %112, %111 : vector<32x64xf32>
    %114 = math.tanh %113 : vector<32x64xf32>
    %cst_43 = arith.constant 1.000000e+00 : f32
    %115 = vector.broadcast %cst_43 : f32 to vector<32x64xf32>
    %116 = arith.addf %115, %114 : vector<32x64xf32>
    %117 = arith.mulf %106, %116 : vector<32x64xf32>
    %118 = arith.truncf %117 : vector<32x64xf32> to vector<32x64xbf16>
    %c0_44 = arith.constant 0 : index
    %c0_45 = arith.constant 0 : index
    %c0_46 = arith.constant 0 : index
    %119 = vector.load %arg14[%c0_44, %c0_45, %c0_46] : memref<1x64x32xbf16, #tpu.memory_space<vmem>>, vector<1x64x32xbf16>
    %120 = vector.shape_cast %119 : vector<1x64x32xbf16> to vector<64x32xbf16>
    %cst_47 = arith.constant dense<0.000000e+00> : vector<32x32xf32>
    %121 = tpu.matmul %118, %120, %cst_47 {dimension_numbers = #tpu.dot_dimension_numbers<[1], [0], [0], [1], [0, 0, 1, 1], [], []>} : vector<32x64xbf16>, vector<64x32xbf16>, vector<32x32xf32> -> vector<32x32xf32>
    %c0_48 = arith.constant 0 : index
    %c0_49 = arith.constant 0 : index
    %c0_50 = arith.constant 0 : index
    %122 = vector.load %arg15[%c0_48, %c0_49, %c0_50] : memref<1x1x32xf32, #tpu.memory_space<vmem>>, vector<1x1x32xf32>
    %123 = vector.shape_cast %122 : vector<1x1x32xf32> to vector<1x32xf32>
    %124 = vector.broadcast %123 : vector<1x32xf32> to vector<32x32xf32>
    %125 = arith.addf %121, %124 : vector<32x32xf32>
    %126 = arith.addf %96, %125 : vector<32x32xf32>
    %c0_51 = arith.constant 0 : index
    %c0_52 = arith.constant 0 : index
    %c0_53 = arith.constant 0 : index
    %127 = vector.load %arg16[%c0_51, %c0_52, %c0_53] : memref<1x1x32xf32, #tpu.memory_space<vmem>>, vector<1x1x32xf32>
    %128 = vector.shape_cast %127 : vector<1x1x32xf32> to vector<1x32xf32>
    %c0_54 = arith.constant 0 : index
    %c0_55 = arith.constant 0 : index
    %c0_56 = arith.constant 0 : index
    %129 = vector.load %arg17[%c0_54, %c0_55, %c0_56] : memref<1x1x32xf32, #tpu.memory_space<vmem>>, vector<1x1x32xf32>
    %130 = vector.shape_cast %129 : vector<1x1x32xf32> to vector<1x32xf32>
    %cst_57 = arith.constant dense<0.000000e+00> : vector<32xf32>
    %131 = vector.multi_reduction <add>, %126, %cst_57 [1] : vector<32x32xf32> to vector<32xf32>
    %132 = vector.shape_cast %131 : vector<32xf32> to vector<32x1xf32>
    %cst_58 = arith.constant 3.200000e+01 : f32
    %133 = vector.broadcast %cst_58 : f32 to vector<32x1xf32>
    %134 = arith.divf %132, %133 : vector<32x1xf32>
    %135 = vector.broadcast %134 : vector<32x1xf32> to vector<32x32xf32>
    %136 = arith.subf %126, %135 : vector<32x32xf32>
    %137 = arith.mulf %136, %136 : vector<32x32xf32>
    %cst_59 = arith.constant dense<0.000000e+00> : vector<32xf32>
    %138 = vector.multi_reduction <add>, %137, %cst_59 [1] : vector<32x32xf32> to vector<32xf32>
    %139 = vector.shape_cast %138 : vector<32xf32> to vector<32x1xf32>
    %cst_60 = arith.constant 3.200000e+01 : f32
    %140 = vector.broadcast %cst_60 : f32 to vector<32x1xf32>
    %141 = arith.divf %139, %140 : vector<32x1xf32>
    %142 = vector.broadcast %134 : vector<32x1xf32> to vector<32x32xf32>
    %143 = arith.subf %126, %142 : vector<32x32xf32>
    %cst_61 = arith.constant 9.99999996E-13 : f32
    %144 = vector.broadcast %cst_61 : f32 to vector<32x1xf32>
    %145 = arith.addf %141, %144 : vector<32x1xf32>
    %146 = math.rsqrt %145 : vector<32x1xf32>
    %147 = vector.broadcast %146 : vector<32x1xf32> to vector<32x32xf32>
    %148 = arith.mulf %143, %147 : vector<32x32xf32>
    %149 = vector.broadcast %128 : vector<1x32xf32> to vector<32x32xf32>
    %150 = arith.mulf %148, %149 : vector<32x32xf32>
    %151 = vector.broadcast %130 : vector<1x32xf32> to vector<32x32xf32>
    %152 = arith.addf %150, %151 : vector<32x32xf32>
    %c0_62 = arith.constant 0 : index
    %c0_63 = arith.constant 0 : index
    %153 = vector.load %arg23[%c0_62, %c0_63] : memref<32x32xf32, #tpu.memory_space<vmem>>, vector<32x32xf32>
    tpu.vector_store %arg23[%c0_62, %c0_63], %152 {strides = array<i32>} : memref<32x32xf32, #tpu.memory_space<vmem>>, vector<32x32xf32>,
    %c1_i32 = arith.constant 1 : i32
    %154 = arith.cmpi eq, %arg1, %c1_i32 : i32
    %155 = arith.extui %154 : i1 to i32
    %c0_i32_64 = arith.constant 0 : i32
    %156 = arith.cmpi ne, %155, %c0_i32_64 : i32
    scf.if %156 {
      %157 = vector.shape_cast %152 : vector<32x32xf32> to vector<4x8x32xf32>
      %158 = vector.extract_strided_slice %157 {offsets = [0, 0, 0], sizes = [4, 1, 32], strides = [1, 1, 1]} : vector<4x8x32xf32> to vector<4x1x32xf32>
      %159 = vector.shape_cast %158 : vector<4x1x32xf32> to vector<4x32xf32>
      %160 = arith.truncf %159 : vector<4x32xf32> to vector<4x32xbf16>
      %c0_65 = arith.constant 0 : index
      %c0_66 = arith.constant 0 : index
      %161 = vector.load %arg18[%c0_65, %c0_66] : memref<32x32xbf16, #tpu.memory_space<vmem>>, vector<32x32xbf16>
      %cst_67 = arith.constant dense<0.000000e+00> : vector<4x32xf32>
      %162 = tpu.matmul %160, %161, %cst_67 {dimension_numbers = #tpu.dot_dimension_numbers<[1], [0], [0], [1], [0, 0, 1, 1], [], []>} : vector<4x32xbf16>, vector<32x32xbf16>, vector<4x32xf32> -> vector<4x32xf32>
      %c0_68 = arith.constant 0 : index
      %c0_69 = arith.constant 0 : index
      %163 = vector.load %arg19[%c0_68, %c0_69] : memref<1x32xf32, #tpu.memory_space<vmem>>, vector<1x32xf32>
      %164 = vector.broadcast %163 : vector<1x32xf32> to vector<4x32xf32>
      %165 = arith.addf %162, %164 : vector<4x32xf32>
      %166 = math.tanh %165 : vector<4x32xf32>
      %c0_70 = arith.constant 0 : index
      %c0_71 = arith.constant 0 : index
      %167 = vector.load %arg20[%c0_70, %c0_71] : memref<64x3xbf16, #tpu.memory_space<vmem>>, vector<64x3xbf16>
      %168 = vector.extract_strided_slice %166 {offsets = [0, 0], sizes = [2, 32], strides = [1, 1]} : vector<4x32xf32> to vector<2x32xf32>
      %169 = arith.truncf %168 : vector<2x32xf32> to vector<2x32xbf16>
      %170 = vector.extract_strided_slice %167 {offsets = [0, 0], sizes = [32, 3], strides = [1, 1]} : vector<64x3xbf16> to vector<32x3xbf16>
      %cst_72 = arith.constant dense<0.000000e+00> : vector<2x3xf32>
      %171 = tpu.matmul %169, %170, %cst_72 {dimension_numbers = #tpu.dot_dimension_numbers<[1], [0], [0], [1], [0, 0, 1, 1], [], []>} : vector<2x32xbf16>, vector<32x3xbf16>, vector<2x3xf32> -> vector<2x3xf32>
      %172 = vector.extract_strided_slice %166 {offsets = [2, 0], sizes = [2, 32], strides = [1, 1]} : vector<4x32xf32> to vector<2x32xf32>
      %173 = arith.truncf %172 : vector<2x32xf32> to vector<2x32xbf16>
      %174 = vector.extract_strided_slice %167 {offsets = [32, 0], sizes = [32, 3], strides = [1, 1]} : vector<64x3xbf16> to vector<32x3xbf16>
      %cst_73 = arith.constant dense<0.000000e+00> : vector<2x3xf32>
      %175 = tpu.matmul %173, %174, %cst_73 {dimension_numbers = #tpu.dot_dimension_numbers<[1], [0], [0], [1], [0, 0, 1, 1], [], []>} : vector<2x32xbf16>, vector<32x3xbf16>, vector<2x3xf32> -> vector<2x3xf32>
      %176 = arith.addf %171, %175 : vector<2x3xf32>
      %c0_74 = arith.constant 0 : index
      %c0_75 = arith.constant 0 : index
      %177 = vector.load %arg21[%c0_74, %c0_75] : memref<1x3xf32, #tpu.memory_space<vmem>>, vector<1x3xf32>
      %178 = vector.broadcast %177 : vector<1x3xf32> to vector<2x3xf32>
      %179 = arith.addf %176, %178 : vector<2x3xf32>
      %180 = vector.shape_cast %179 : vector<2x3xf32> to vector<2x1x3xf32>
      %c0_76 = arith.constant 0 : index
      %c0_77 = arith.constant 0 : index
      %c0_78 = arith.constant 0 : index
      %181 = vector.load %arg22[%c0_76, %c0_77, %c0_78] : memref<2x1x3xf32, #tpu.memory_space<vmem>>, vector<2x1x3xf32>
      tpu.vector_store %arg22[%c0_76, %c0_77, %c0_78], %180 {strides = array<i32>} : memref<2x1x3xf32, #tpu.memory_space<vmem>>, vector<2x1x3xf32>,
    } else {
    }
    return
  }
  func.func @transform_0(%arg0: i32, %arg1: i32) -> (i32, i32, i32) {
    %c0_i32 = arith.constant 0 : i32
    %c0_i32_0 = arith.constant 0 : i32
    %c0_i32_1 = arith.constant 0 : i32
    return %arg0, %c0_i32, %c0_i32_0 : i32, i32, i32
  }
  func.func @transform_1(%arg0: i32, %arg1: i32) -> (i32, i32, i32) {
    %c0_i32 = arith.constant 0 : i32
    %c0_i32_0 = arith.constant 0 : i32
    %c0_i32_1 = arith.constant 0 : i32
    return %arg0, %c0_i32, %c0_i32_0 : i32, i32, i32
  }
  func.func @transform_2(%arg0: i32, %arg1: i32) -> (i32, i32) {
    %c0_i32 = arith.constant 0 : i32
    %c0_i32_0 = arith.constant 0 : i32
    %c0_i32_1 = arith.constant 0 : i32
    return %c0_i32, %c0_i32_0 : i32, i32
  }
  func.func @transform_3(%arg0: i32, %arg1: i32) -> (i32, i32) {
    %c0_i32 = arith.constant 0 : i32
    %c0_i32_0 = arith.constant 0 : i32
    %c0_i32_1 = arith.constant 0 : i32
    return %c0_i32, %c0_i32_0 : i32, i32
  }
  func.func @transform_4(%arg0: i32, %arg1: i32) -> (i32, i32, i32) {
    %c0_i32 = arith.constant 0 : i32
    %c0_i32_0 = arith.constant 0 : i32
    %c0_i32_1 = arith.constant 0 : i32
    return %arg1, %c0_i32, %c0_i32_0 : i32, i32, i32
  }
  func.func @transform_5(%arg0: i32, %arg1: i32) -> (i32, i32, i32) {
    %c0_i32 = arith.constant 0 : i32
    %c0_i32_0 = arith.constant 0 : i32
    %c0_i32_1 = arith.constant 0 : i32
    return %arg1, %c0_i32, %c0_i32_0 : i32, i32, i32
  }
  func.func @transform_6(%arg0: i32, %arg1: i32) -> (i32, i32, i32) {
    %c0_i32 = arith.constant 0 : i32
    %c0_i32_0 = arith.constant 0 : i32
    %c0_i32_1 = arith.constant 0 : i32
    return %arg1, %c0_i32, %c0_i32_0 : i32, i32, i32
  }
  func.func @transform_7(%arg0: i32, %arg1: i32) -> (i32, i32, i32) {
    %c0_i32 = arith.constant 0 : i32
    %c0_i32_0 = arith.constant 0 : i32
    %c0_i32_1 = arith.constant 0 : i32
    return %arg1, %c0_i32, %c0_i32_0 : i32, i32, i32
  }
  func.func @transform_8(%arg0: i32, %arg1: i32) -> (i32, i32, i32) {
    %c0_i32 = arith.constant 0 : i32
    %c0_i32_0 = arith.constant 0 : i32
    %c0_i32_1 = arith.constant 0 : i32
    return %arg1, %c0_i32, %c0_i32_0 : i32, i32, i32
  }
  func.func @transform_9(%arg0: i32, %arg1: i32) -> (i32, i32, i32) {
    %c0_i32 = arith.constant 0 : i32
    %c0_i32_0 = arith.constant 0 : i32
    %c0_i32_1 = arith.constant 0 : i32
    return %arg1, %c0_i32, %c0_i32_0 : i32, i32, i32
  }
  func.func @transform_10(%arg0: i32, %arg1: i32) -> (i32, i32, i32) {
    %c0_i32 = arith.constant 0 : i32
    %c0_i32_0 = arith.constant 0 : i32
    %c0_i32_1 = arith.constant 0 : i32
    return %arg1, %c0_i32, %c0_i32_0 : i32, i32, i32
  }
  func.func @transform_11(%arg0: i32, %arg1: i32) -> (i32, i32, i32) {
    %c0_i32 = arith.constant 0 : i32
    %c0_i32_0 = arith.constant 0 : i32
    %c0_i32_1 = arith.constant 0 : i32
    return %arg1, %c0_i32, %c0_i32_0 : i32, i32, i32
  }
  func.func @transform_12(%arg0: i32, %arg1: i32) -> (i32, i32, i32) {
    %c0_i32 = arith.constant 0 : i32
    %c0_i32_0 = arith.constant 0 : i32
    %c0_i32_1 = arith.constant 0 : i32
    return %arg1, %c0_i32, %c0_i32_0 : i32, i32, i32
  }
  func.func @transform_13(%arg0: i32, %arg1: i32) -> (i32, i32, i32) {
    %c0_i32 = arith.constant 0 : i32
    %c0_i32_0 = arith.constant 0 : i32
    %c0_i32_1 = arith.constant 0 : i32
    return %arg1, %c0_i32, %c0_i32_0 : i32, i32, i32
  }
  func.func @transform_14(%arg0: i32, %arg1: i32) -> (i32, i32, i32) {
    %c0_i32 = arith.constant 0 : i32
    %c0_i32_0 = arith.constant 0 : i32
    %c0_i32_1 = arith.constant 0 : i32
    return %arg1, %c0_i32, %c0_i32_0 : i32, i32, i32
  }
  func.func @transform_15(%arg0: i32, %arg1: i32) -> (i32, i32, i32) {
    %c0_i32 = arith.constant 0 : i32
    %c0_i32_0 = arith.constant 0 : i32
    %c0_i32_1 = arith.constant 0 : i32
    return %arg1, %c0_i32, %c0_i32_0 : i32, i32, i32
  }
  func.func @transform_16(%arg0: i32, %arg1: i32) -> (i32, i32) {
    %c0_i32 = arith.constant 0 : i32
    %c0_i32_0 = arith.constant 0 : i32
    %c0_i32_1 = arith.constant 0 : i32
    return %c0_i32, %c0_i32_0 : i32, i32
  }
  func.func @transform_17(%arg0: i32, %arg1: i32) -> (i32, i32) {
    %c0_i32 = arith.constant 0 : i32
    %c0_i32_0 = arith.constant 0 : i32
    %c0_i32_1 = arith.constant 0 : i32
    return %c0_i32, %c0_i32_0 : i32, i32
  }
  func.func @transform_18(%arg0: i32, %arg1: i32) -> (i32, i32) {
    %c0_i32 = arith.constant 0 : i32
    %c0_i32_0 = arith.constant 0 : i32
    %c0_i32_1 = arith.constant 0 : i32
    return %c0_i32, %c0_i32_0 : i32, i32
  }
  func.func @transform_19(%arg0: i32, %arg1: i32) -> (i32, i32) {
    %c0_i32 = arith.constant 0 : i32
    %c0_i32_0 = arith.constant 0 : i32
    %c0_i32_1 = arith.constant 0 : i32
    return %c0_i32, %c0_i32_0 : i32, i32
  }
  func.func @transform_20(%arg0: i32, %arg1: i32) -> (i32, i32, i32) {
    %c0_i32 = arith.constant 0 : i32
    %c0_i32_0 = arith.constant 0 : i32
    %c0_i32_1 = arith.constant 0 : i32
    return %arg0, %c0_i32, %c0_i32_0 : i32, i32, i32
  }
}

</mosaic_0001>

<bundles_post_ra>
// kernel: bert_classifier_forward.1
= control target key start
LH: loop header
LB: loop body
LE: loop exit
PB: predicated region body
PF: predicated region fallthrough
CT: control target
= control target key end

     0   :  { %s5449_s0 = inlined_call_operand.vmem [shape: f32[4,8,32], index: 0, kind: input, shape index: {}]   ;;  %s5450_s1 = inlined_call_operand.vmem [shape: f32[4,1,8], index: 1, kind: input, shape index: {}]   ;;  %s5451_s2 = inlined_call_operand.vmem [shape: f32[1,32], index: 2, kind: input, shape index: {}]   ;;  %s5452_s3 = inlined_call_operand.vmem [shape: f32[1,32], index: 3, kind: input, shape index: {}]   ;;  %s5453_s4 = inlined_call_operand.vmem [shape: bf16[2,32,96], index: 4, kind: input, shape index: {}]   ;;  %s5454_s5 = inlined_call_operand.vmem [shape: f32[2,1,96], index: 5, kind: input, shape index: {}]   ;;  %s5455_s6 = inlined_call_operand.vmem [shape: bf16[2,32,32], index: 6, kind: input, shape index: {}]   ;;  %s5456_s7 = inlined_call_operand.vmem [shape: f32[2,1,32], index: 7, kind: input, shape index: {}]   ;;  %s5457_s8 = inlined_call_operand.vmem [shape: f32[2,1,32], index: 8, kind: input, shape index: {}]   ;;  %s5458_s9 = inlined_call_operand.vmem [shape: f32[2,1,32], index: 9, kind: input, shape index: {}]   ;;  %s5459_s10 = inlined_call_operand.vmem [shape: bf16[2,32,64], index: 10, kind: input, shape index: {}]   ;;  %s5460_s11 = inlined_call_operand.vmem [shape: f32[2,1,64], index: 11, kind: input, shape index: {}]   ;;  %s5461_s12 = inlined_call_operand.vmem [shape: bf16[2,64,32], index: 12, kind: input, shape index: {}]   ;;  %s5462_s13 = inlined_call_operand.vmem [shape: f32[2,1,32], index: 13, kind: input, shape index: {}]   ;;  %s5463_s14 = inlined_call_operand.vmem [shape: f32[2,1,32], index: 14, kind: input, shape index: {}]   ;;  %s5464_s15 = inlined_call_operand.vmem [shape: f32[2,1,32], index: 15, kind: input, shape index: {}]   ;;  %s5465_s16 = inlined_call_operand.vmem [shape: bf16[32,32], index: 16, kind: input, shape index: {}]   ;;  %s5466_s17 = inlined_call_operand.vmem [shape: f32[1,32], index: 17, kind: input, shape index: {}]   ;;  %s5467_s18 = inlined_call_operand.vmem [shape: bf16[64,3], index: 18, kind: input, shape index: {}]   ;;  %s5468_s19 = inlined_call_operand.vmem [shape: f32[1,3], index: 19, kind: input, shape index: {}]   ;;  %s5469_s20 = inlined_call_operand.hbm [shape: f32[2,1,3], index: 20, kind: output, shape index: {}]  }
   0x1   :  { %5477 = sst [smem:[#allocation9_spill]] %s5449_s0 }
   0x2   :  { %5478 = sst [smem:[#allocation10_spill]] %s5450_s1 }
   0x3   :  { %5479 = sst [smem:[#allocation11_spill]] %s5451_s2 }
   0x4   :  { %5480 = sst [smem:[#allocation12_spill]] %s5452_s3 }
   0x5   :  { %5481 = sst [smem:[#allocation13_spill]] %s5453_s4 }
   0x6   :  { %5482 = sst [smem:[#allocation14_spill]] %s5455_s6 }
   0x7   :  { %5483 = sst [smem:[#allocation15_spill]] %s5465_s16 }
   0x8   :  { %5484 = sst [smem:[#allocation16_spill]] %s5466_s17 }
   0x9   :  { %5485 = sst [smem:[#allocation17_spill]] %s5467_s18 }
   0xa   :  { %5486 = sst [smem:[#allocation18_spill]] %s5468_s19 }
   0xb   :  { %5487 = sst [smem:[#allocation19_spill]] %s5469_s20 }
   0xc   :  { %25 = vsyncpa [#allocation4], 0  ;;  %s4653_s1 = smov 0   ;;  %s4655_s22 = smov 0  }
   0xd   :  { %s4657_s23 = smov 0  }
   0xe LB: > { %5488 = sst [smem:[#allocation6_spill]] %s4527_s22  ;;  %s40_s2 = sadd.s32 1, %s4527_s22  ;;  %s4531_s23 = sphi %s4657_s23, %s31_s23   ;;  %s4527_s22 = sphi %s4655_s22, %s5512_s22   ;;  %s4523_s1 = sphi %s4653_s1, %s5511_s1  }
   0xf   : > { %5489 = sst [smem:[#allocation7_spill]] %s4531_s23  ;;  %p41_p0 = scmp.ge.s32.totalorder %s40_s2, 2 }
  0x10   : > { %p3819_p1 = scmp.ge.s32.totalorder %s4531_s23, 1  ;;  %p690_p2 = scmp.lt.s32.totalorder %s4531_s23, 3 }
  0x11   : > { %s5514_s2 = smov (%p41_p0, %s40_s2), 0 }
  0x12   : > { %5490 = sst [smem:[#allocation8_spill]] %s5514_s2  ;;  %p691_p3 = pnand %p3819_p1, %p690_p2 }
  0x13   : > { %p802_p4 = scmp.lt.s32.totalorder (!%p691_p3), %s4523_s1, 1  ;;  %s5491_s30 = sld [smem:[#allocation13_spill]] (!%p691_p3) }
  0x14   : > { %694 = sbr.rel (%p691_p3) target bundleno = 3595 (0xe0b), region = 100  ;;  %s5492_s6 = sld [smem:[#allocation14_spill]] (!%p691_p3) }
  0x15   : > { %p3828_p5 = scmp.ne.s32.totalorder (!%p691_p3), %s4523_s1, 0 }
  0x1b   : > { %s4676_s25 = scalar_select %p802_p4, %s4523_s1, 1 }
  0x1c   : > { %851 = sbr.rel (%p3828_p5) target bundleno = 357 (0x165), region = 104  ;;  %s5493_s20 = sld [smem:[#allocation9_spill]] (!%p3828_p5)  ;;  %vm858_vm0 = vcmask (!%p3828_p5), 261120  }
  0x1d   : > { %s3909_s3 = sshll.u32 %s4676_s25, 4  ;;  %s3912_s16 = sshll.u32 %s4676_s25, 5 }
  0x1e   : > { %s4686_s0 = scalar_lea.vmem %s5491_s30, %s3909_s3  ;;  %s4691_s2 = scalar_lea.vmem %s5492_s6, %s3909_s3 }
  0x1f   : > { %s4708_s30 = scalar_lea.vmem %s5459_s10, %s3909_s3  ;;  %s831_s6 = scalar_lea.vmem %s5460_s11, %s4676_s25 }
  0x20   : > { %s4718_s23 = scalar_lea.vmem %s5461_s12, %s3912_s16  ;;  %s839_s26 = scalar_lea.vmem %s5462_s13, %s4676_s25 }
  0x21   : > { %s842_s4 = scalar_lea.vmem %s5463_s14, %s4676_s25  ;;  %s845_s18 = scalar_lea.vmem %s5464_s15, %s4676_s25 }
  0x22   : > { %v852_v0 = vld [vmem:[%s5493_s20] sm:$0xff] (!%p3828_p5)  ;;  %v854_v1 = vld [vmem:[%s5493_s20 + $0x10] sm:$0xff] (!%p3828_p5)  ;;  %v853_v2 = vld [vmem:[%s5493_s20 + $0x8] sm:$0xff] (!%p3828_p5)  ;;  %s5494_s24 = sld [smem:[#allocation11_spill]] (!%p3828_p5)  ;;  %s5495_s22 = sld [smem:[#allocation12_spill]] (!%p3828_p5) }
  0x23   : > { %v859_v3 = vsel %vm858_vm0, %v852_v0, 0.0  ;;  %v865_v4 = vsel %vm858_vm0, %v854_v1, 0.0  ;;  %v855_v5 = vld [vmem:[%s5493_s20 + $0x18] sm:$0xff]  ;;  %v862_v6 = vsel %vm858_vm0, %v853_v2, 0.0 }
  0x24   : > { %860 = vadd.xlane.f32.xlu0 %v859_v3  ;;  %866 = vadd.xlane.f32.xlu1 %v865_v4  ;;  %v868_v7 = vsel %vm858_vm0, %v855_v5, 0.0 }
  0x28   : > { %863 = vadd.xlane.f32.xlu0 %v862_v6  ;;  %869 = vadd.xlane.f32.xlu1 %v868_v7  ;;  %v3829_v41 = vld [vmem:[%s5494_s24] ss:$0 sm:$0xff] }
  0x29   : > { %v3830_v43 = vld [vmem:[%s5495_s22] ss:$0 sm:$0xff] }
  0xb1   : > { %v861_v8 = vpop.xlane.xlu0 %860  ;;  %v867_v9 = vpop.xlane.xlu1 %866 }
  0xb2   : > { %v872_v10 = vmul.f32 0.03125, %v861_v8  ;;  %v874_v11 = vmul.f32 0.03125, %v867_v9 }
  0xb4   : > { %v876_v12 = vsub.f32 %v852_v0, %v872_v10  ;;  %v878_v13 = vsub.f32 %v854_v1, %v874_v11 }
  0xb5   : > { %v864_v14 = vpop.xlane.xlu0 %863  ;;  %v870_v15 = vpop.xlane.xlu1 %869 }
  0xb6   : > { %v873_v16 = vmul.f32 0.03125, %v864_v14  ;;  %v875_v17 = vmul.f32 0.03125, %v870_v15  ;;  %v880_v18 = vmul.f32 %v876_v12, %v876_v12  ;;  %v882_v19 = vmul.f32 %v878_v13, %v878_v13 }
  0xb8   : > { %v877_v20 = vsub.f32 %v853_v2, %v873_v16  ;;  %v879_v21 = vsub.f32 %v855_v5, %v875_v17  ;;  %v884_v22 = vsel %vm858_vm0, %v880_v18, 0.0  ;;  %v890_v23 = vsel %vm858_vm0, %v882_v19, 0.0 }
  0xb9   : > { %885 = vadd.xlane.f32.xlu0 %v884_v22 }
  0xba   : > { %v881_v24 = vmul.f32 %v877_v20, %v877_v20  ;;  %v883_v25 = vmul.f32 %v879_v21, %v879_v21 }
  0xbc   : > { %v887_v26 = vsel %vm858_vm0, %v881_v24, 0.0  ;;  %v893_v27 = vsel %vm858_vm0, %v883_v25, 0.0 }
  0xbd   : > { %891 = vadd.xlane.f32.xlu0 %v890_v23  ;;  %888 = vadd.xlane.f32.xlu1 %v887_v26 }
  0xc1   : > { %894 = vadd.xlane.f32.xlu1 %v893_v27 }
 0x146   : > { %v886_v28 = vpop.xlane.xlu0 %885 }
 0x147   : > { %v896_v29 = vmul.f32 0.03125, %v886_v28 }
 0x149   : > { %v900_v30 = vadd.f32 1e-12, %v896_v29 }
 0x14a   : > { %v889_v31 = vpop.xlane.xlu1 %888  ;;  %v892_v32 = vpop.xlane.xlu0 %891 }
 0x14b   : > { %4301 = vrsqrt.f32 %v900_v30  ;;  %v897_v33 = vmul.f32 0.03125, %v889_v31  ;;  %v898_v34 = vmul.f32 0.03125, %v892_v32 }
 0x14d   : > { %v901_v35 = vadd.f32 1e-12, %v897_v33  ;;  %v902_v36 = vadd.f32 1e-12, %v898_v34 }
 0x14e   : > { %v895_v37 = vpop.xlane.xlu1 %894 }
 0x14f   : > { %4303 = vrsqrt.f32 %v901_v35  ;;  %v899_v38 = vmul.f32 0.03125, %v895_v37 }
 0x150   : > { %4305 = vrsqrt.f32 %v902_v36 }
 0x151   : > { %v903_v39 = vadd.f32 1e-12, %v899_v38 }
 0x153   : > { %4307 = vrsqrt.f32 %v903_v39 }
 0x155   : > { %v4302_v40 = vpop.eup %4301 }
 0x156   : > { %v908_v42 = vmul.f32 %v4302_v40, %v876_v12 }
 0x158   : > { %v918_v44 = vmul.f32 %v3829_v41, %v908_v42 }
 0x159   : > { %v4304_v45 = vpop.eup %4303 }
 0x15a   : > { %v4306_v46 = vpop.eup %4305  ;;  %v928_v47 = vadd.f32 %v3830_v43, %v918_v44  ;;  %v909_v48 = vmul.f32 %v4304_v45, %v877_v20 }
 0x15b   : > { %v910_v49 = vmul.f32 %v4306_v46, %v878_v13 }
 0x15c   : > { %932 = vst.msk [vmem:[#allocation2] sm:$0xff] %vm858_vm0, %v928_v47  ;;  %v919_v50 = vmul.f32 %v3829_v41, %v909_v48 }
 0x15d   : > { %v4308_v51 = vpop.eup %4307  ;;  %v920_v52 = vmul.f32 %v3829_v41, %v910_v49 }
 0x15e   : > { %v929_v53 = vadd.f32 %v3830_v43, %v919_v50  ;;  %v911_v54 = vmul.f32 %v4308_v51, %v879_v21 }
 0x15f   : > { %v930_v55 = vadd.f32 %v3830_v43, %v920_v52 }
 0x160   : > { %933 = vst.msk [vmem:[#allocation2 + $0x8] sm:$0xff] %vm858_vm0, %v929_v53  ;;  %v921_v56 = vmul.f32 %v3829_v41, %v911_v54 }
 0x161   : > { %934 = vst.msk [vmem:[#allocation2 + $0x10] sm:$0xff] %vm858_vm0, %v930_v55 }
 0x162   : > { %v931_v57 = vadd.f32 %v3830_v43, %v921_v56 }
 0x164   : > { %935 = vst.msk [vmem:[#allocation2 + $0x18] sm:$0xff] %vm858_vm0, %v931_v57 }
 0x165 PF: > { %v4369_v58 = vld [vmem:[%s4686_s0] sm:$0xff]   ;;  %v4370_v59 = vld [vmem:[%s4686_s0 + $0x8] sm:$0xff]   ;;  %vm969_vm1 = vcmask 261120   ;;  %s5496_s0 = scalar_lea.vmem %s5454_s5, %s4676_s25  ;;  %s4533_s28 = smov 112   ;;  %v4535_v13 = vmov 0.0   ;;  %vm4536_vm2 = vmmov 0  }
 0x166   : > { %4004 = vmatprep.subr.bf16.mxu0 %v4369_v58  ;;  %v936_v60 = vld [vmem:[#allocation2] sm:$0xff]  ;;  %s4534_s27 = smov 120   ;;  %4012 = vmatprep.subr.bf16.mxu1 %v4535_v13  ;;  %s4537_s3 = smov 104   ;;  %vm1108_vm3 = vcmask 64512   ;;  %vm2087_vm4 = vcmask 1043456   ;;  %vm2903_vm5 = vcmask 130048  }
 0x167   : > { %v937_v61 = vld [vmem:[#allocation2 + $0x8] sm:$0xff]  ;;  %4005 = vmatpush3.bf16.msra.mxu0 %v4369_v58  ;;  %v3831_v3 = vld [vmem:[%s5496_s0] ss:$0 sm:$0xff]  ;;  %4014 = vmatprep.mubr.msk.bf16.mxu1 %vm4536_vm2, %v4535_v13  ;;  %s4538_s29 = smov 96   ;;  %s4539_s24 = smov 64   ;;  %vm2908_vm6 = vcmask 195584  }
 0x168   : > { %v938_v62 = vld [vmem:[#allocation2 + $0x10] sm:$0xff]  ;;  %v944_v63 = vpack.c.bf16 %v937_v61, %v936_v60  ;;  %4006 = vmatprep.subr.bf16.mxu0 %v4370_v59  ;;  %s5497_s22 = sld [smem:[#allocation10_spill]]  ;;  %s4541_s21 = smov 16   ;;  %vm3229_vm7 = vcmask 523264  }
 0x169   : > { %s4542_s16 = smov 24   ;;  %s5499_s19 = scalar_lea.vmem %s5456_s7, %s4676_s25 }
 0x16a   : > { %4008 = vmatprep.mubr.msk.bf16.mxu0 %vm969_vm1, %v944_v63  ;;  %p3893_p6 = scmp.ne.s32.totalorder %s4523_s1, 1 }
 0x16b   : > { %v939_v0 = vld [vmem:[#allocation2 + $0x18] sm:$0xff]  ;;  %4007 = vmatpush3.bf16.msra.mxu0 %v4370_v59  ;;  %vm4544_vm8 = vmmov (!%p3893_p6), 0   ;;  %vm3395_vm9 = vcmask (!%p3893_p6), 1041409   ;;  %vm3398_vm10 = vcmask (!%p3893_p6), 1042434   ;;  %vm3401_vm11 = vcmask (!%p3893_p6), 1043459  }
 0x16c   : > { %v945_v1 = vpack.c.bf16 %v939_v0, %v938_v62  ;;  %4018 = vmatprep.subr.bf16.mxu0 %v4535_v13  ;;  %vm3614_vm12 = vcmask (!%p3893_p6), 16384  }
 0x16e   : > { %4009 = vmatmul.mubr.msk.bf16.vlgmr.msra.gmra.mrb[0].mxu0 %vm969_vm1, %v945_v1  ;;  %s5498_s17 = smov %s5497_s22 }
 0x16f   : > { %4020 = vmatprep.mubr.msk.bf16.mxu0 %vm4536_vm2, %v4535_v13 }
 0x241   : > { %v4010_v2 = vpop.f32.mrb[0].mxu0 }
 0x242   : > { %v1010_v4 = vpop.f32.mrb[1].mxu0  ;;  %v1019_v6 = vadd.f32 %v4010_v2, %v3831_v3 }
 0x243   : > { %v4011_v5 = vpop.f32.mrb[2].mxu0  ;;  %v1011_v9 = vadd.f32 %v3831_v3, %v1010_v4 }
 0x244   : > { %v1022_v7 = vadd.f32 %v4011_v5, %v3831_v3  ;;  %v1013_v8 = vpop.f32.mrb[3].mxu0  ;;  %v4788_v17 = vpack.c.bf16 %v1019_v6, %v1019_v6 }
 0x245   : > { %v1014_v10 = vadd.f32 %v3831_v3, %v1013_v8  ;;  %v4780_v15 = vpack.c.bf16 %v1011_v9, %v1011_v9 }
 0x246   : > { %v4324_v11 = vpack.i.bf16 %v1022_v7, %v1019_v6  ;;  %v4786_v16 = vpack.c.bf16 %v1022_v7, %v1022_v7 }
 0x247   : > { %v4319_v12 = vpack.i.bf16 %v1014_v10, %v1011_v9  ;;  %v4778_v14 = vpack.c.bf16 %v1014_v10, %v1014_v10 }
 0x249   : > { %4320 = vrot.lane.b32.xlu1 %v4319_v12, %s4533_s28  ;;  %4310 = vrot.lane.b32.xlu0 %v4319_v12, %s4534_s27 }
 0x24d   : > { %4325 = vrot.lane.b32.xlu1 %v4324_v11, %s4533_s28  ;;  %4315 = vrot.lane.b32.xlu0 %v4324_v11, %s4534_s27  ;;  %s5500_s28 = scalar_lea.vmem %s5457_s8, %s4676_s25  ;;  %s5503_s27 = sld [smem:[#allocation17_spill]] (!%p3893_p6) }
 0x251   : > { %4335 = vrot.lane.b32.xlu1 %v4324_v11, %s4537_s3  ;;  %4330 = vrot.lane.b32.xlu0 %v4319_v12, %s4537_s3 }
 0x255   : > { %1156 = vrot.lane.b32.xlu1 %v4778_v14, %s4538_s29  ;;  %1106 = vrot.lane.b32.xlu0 %v4780_v15, %s4538_s29 }
 0x259   : > { %1254 = vrot.lane.b32.xlu1 %v4786_v16, %s4538_s29  ;;  %1205 = vrot.lane.b32.xlu0 %v4788_v17, %s4538_s29 }
 0x2bb   : > { %v4321_v18 = vpop.permute.xlu1 %4320  ;;  %v4311_v19 = vpop.permute.xlu0 %4310 }
 0x2bc   : > { %v4313_v20 = vunpack.i.h.bf16 %v4311_v19  ;;  %v4312_v21 = vunpack.i.l.bf16 %v4311_v19  ;;  %v4323_v28 = vunpack.i.h.bf16 %v4321_v18  ;;  %v4322_v29 = vunpack.i.l.bf16 %v4321_v18 }
 0x2be   : > { %v4794_v22 = vpack.c.bf16 %v4313_v20, %v4313_v20  ;;  %v4796_v23 = vpack.c.bf16 %v4312_v21, %v4312_v21  ;;  %v4810_v34 = vpack.c.bf16 %v4323_v28, %v4323_v28  ;;  %v4812_v35 = vpack.c.bf16 %v4322_v29, %v4322_v29  ;;  %v4963_v21 = vld [vmem:[%s5497_s22 + $0x1] ss:$0 sm:$0xff]  ;;  %s5504_s22 = sld [smem:[#allocation16_spill]] (!%p3893_p6) }
 0x2bf   : > { %v4326_v24 = vpop.permute.xlu1 %4325  ;;  %v4316_v25 = vpop.permute.xlu0 %4315 }
 0x2c0   : > { %v4318_v26 = vunpack.i.h.bf16 %v4316_v25  ;;  %v4317_v27 = vunpack.i.l.bf16 %v4316_v25  ;;  %1352 = vrot.lane.b32.xlu1 %v4794_v22, %s4538_s29  ;;  %1303 = vrot.lane.b32.xlu0 %v4796_v23, %s4538_s29  ;;  %v4328_v36 = vunpack.i.h.bf16 %v4326_v24  ;;  %v4327_v37 = vunpack.i.l.bf16 %v4326_v24 }
 0x2c2   : > { %v4802_v30 = vpack.c.bf16 %v4318_v26, %v4318_v26  ;;  %v4804_v31 = vpack.c.bf16 %v4317_v27, %v4317_v27  ;;  %v4820_v42 = vpack.c.bf16 %v4328_v36, %v4328_v36  ;;  %v4822_v43 = vpack.c.bf16 %v4327_v37, %v4327_v37  ;;  %v4983_v36 = vld [vmem:[%s5498_s17 + $0x2] ss:$0 sm:$0xff] }
 0x2c3   : > { %v4336_v32 = vpop.permute.xlu1 %4335  ;;  %v4331_v33 = vpop.permute.xlu0 %4330 }
 0x2c4   : > { %1450 = vrot.lane.b32.xlu1 %v4802_v30, %s4538_s29  ;;  %1401 = vrot.lane.b32.xlu0 %v4804_v31, %s4538_s29  ;;  %v4333_v44 = vunpack.i.h.bf16 %v4331_v33  ;;  %v4332_v45 = vunpack.i.l.bf16 %v4331_v33  ;;  %v4338_v46 = vunpack.i.h.bf16 %v4336_v32  ;;  %v4337_v50 = vunpack.i.l.bf16 %v4336_v32 }
 0x2c6   : > { %v4830_v47 = vpack.c.bf16 %v4333_v44, %v4333_v44  ;;  %v4832_v51 = vpack.c.bf16 %v4332_v45, %v4332_v45  ;;  %v4844_v54 = vpack.c.bf16 %v4338_v46, %v4338_v46  ;;  %v4846_v55 = vpack.c.bf16 %v4337_v50, %v4337_v50 }
 0x2c7   : > { %v1157_v38 = vpop.permute.xlu1 %1156  ;;  %v1107_v39 = vpop.permute.xlu0 %1106 }
 0x2c8   : > { %v1162_v40 = vsel %vm1108_vm3, %v1157_v38, 0  ;;  %1548 = vrot.lane.b32.xlu1 %v4810_v34, %s4538_s29  ;;  %1499 = vrot.lane.b32.xlu0 %v4812_v35, %s4538_s29  ;;  %v1113_v41 = vsel %vm1108_vm3, %v1107_v39, 0  ;;  %v4988_v39 = vld [vmem:[%s5498_s17 + $0x3] ss:$0 sm:$0xff] }
 0x2c9   : > { %4013 = vmatpush3.bf16.xpose.msra.mxu1 %v1113_v41  ;;  %4019 = vmatpush3.bf16.xpose.msra.mxu0 %v1162_v40 }
 0x2ca   : > { %4030 = vmatprep.subr.bf16.mxu0 %v4535_v13  ;;  %4024 = vmatprep.subr.bf16.mxu1 %v4535_v13 }
 0x2cb   : > { %v1255_v48 = vpop.permute.xlu1 %1254  ;;  %v1206_v49 = vpop.permute.xlu0 %1205 }
 0x2cc   : > { %1646 = vrot.lane.b32.xlu1 %v4820_v42, %s4538_s29  ;;  %1597 = vrot.lane.b32.xlu0 %v4822_v43, %s4538_s29  ;;  %v1260_v52 = vsel %vm1108_vm3, %v1255_v48, 0  ;;  %v1211_v53 = vsel %vm1108_vm3, %v1206_v49, 0 }
 0x2d0   : > { %4021 = vmatmul.mubr.msk.bf16.vlgmr.msra.gmra.mrb[4].mxu0 %vm1108_vm3, %v4778_v14  ;;  %1744 = vrot.lane.b32.xlu1 %v4830_v47, %s4538_s29 }
 0x2d1   : > { %1695 = vrot.lane.b32.xlu0 %v4832_v51, %s4538_s29  ;;  %4015 = vmatmul.mubr.msk.bf16.vlgmr.msra.gmra.mrb[0].mxu1 %vm1108_vm3, %v4780_v15 }
 0x2d2   : > { %4025 = vmatpush3.bf16.xpose.msra.mxu1 %v1211_v53  ;;  %4031 = vmatpush3.bf16.xpose.msra.mxu0 %v1260_v52 }
 0x2d3   : > { %4026 = vmatprep.mubr.msk.bf16.mxu1 %vm4536_vm2, %v4535_v13  ;;  %4032 = vmatprep.mubr.msk.bf16.mxu0 %vm4536_vm2, %v4535_v13 }
 0x2d4   : > { %1842 = vrot.lane.b32.xlu1 %v4844_v54, %s4538_s29  ;;  %4036 = vmatprep.subr.bf16.mxu1 %v4535_v13 }
 0x2d5   : > { %1793 = vrot.lane.b32.xlu0 %v4846_v55, %s4538_s29  ;;  %4042 = vmatprep.subr.bf16.mxu0 %v4535_v13  ;;  %s5501_s29 = scalar_lea.vmem %s5458_s9, %s4676_s25  ;;  %s5505_s25 = sld [smem:[#allocation18_spill]] (!%p3893_p6) }
 0x2d8   : > { %2082 = vrot.lane.b32.xlu1 %v4780_v15, %s4539_s24 }
 0x2d9   : > { %4033 = vmatmul.mubr.msk.bf16.vlgmr.msra.gmra.mrb[8].mxu0 %vm1108_vm3, %v4786_v16  ;;  %2131 = vrot.lane.b32.xlu0 %v4778_v14, %s4539_s24 }
 0x2da   : > { %4027 = vmatmul.mubr.msk.bf16.vlgmr.msra.gmra.mrb[4].mxu1 %vm1108_vm3, %v4788_v17  ;;  %4044 = vmatprep.mubr.msk.bf16.mxu0 %vm4536_vm2, %v4535_v13 }
 0x2db   : > { %4038 = vmatprep.mubr.msk.bf16.mxu1 %vm4536_vm2, %v4535_v13 }
 0x2dc   : > { %2179 = vrot.lane.b32.xlu1 %v4788_v17, %s4539_s24 }
 0x2dd   : > { %2227 = vrot.lane.b32.xlu0 %v4786_v16, %s4539_s24 }
 0x2e0   : > { %2275 = vrot.lane.b32.xlu1 %v4796_v23, %s4539_s24 }
 0x2e1   : > { %2419 = vrot.lane.b32.xlu0 %v4802_v30, %s4539_s24 }
 0x2e4   : > { %2371 = vrot.lane.b32.xlu1 %v4804_v31, %s4539_s24 }
 0x2e5   : > { %2323 = vrot.lane.b32.xlu0 %v4794_v22, %s4539_s24 }
 0x2e8   : > { %2467 = vrot.lane.b32.xlu1 %v4812_v35, %s4539_s24 }
 0x332   : > { %v1353_v56 = vpop.permute.xlu1 %1352  ;;  %v1304_v57 = vpop.permute.xlu0 %1303 }
 0x333   : > { %v1358_v58 = vsel %vm1108_vm3, %v1353_v56, 0  ;;  %v1309_v59 = vsel %vm1108_vm3, %v1304_v57, 0 }
 0x334   : > { %4037 = vmatpush3.bf16.xpose.msra.mxu1 %v1309_v59  ;;  %4043 = vmatpush3.bf16.xpose.msra.mxu0 %v1358_v58 }
 0x335   : > { %4048 = vmatprep.subr.bf16.mxu1 %v4535_v13  ;;  %4054 = vmatprep.subr.bf16.mxu0 %v4535_v13 }
 0x336   : > { %v1451_v60 = vpop.permute.xlu1 %1450  ;;  %v1402_v61 = vpop.permute.xlu0 %1401 }
 0x337   : > { %v1456_v62 = vsel %vm1108_vm3, %v1451_v60, 0  ;;  %v1407_v63 = vsel %vm1108_vm3, %v1402_v61, 0 }
 0x33a   : > { %v1549_v0 = vpop.permute.xlu1 %1548  ;;  %v1500_v1 = vpop.permute.xlu0 %1499 }
 0x33b   : > { %4039 = vmatmul.mubr.msk.bf16.vlgmr.msra.gmra.mrb[8].mxu1 %vm1108_vm3, %v4796_v23  ;;  %4045 = vmatmul.mubr.msk.bf16.vlgmr.msra.gmra.mrb[12].mxu0 %vm1108_vm3, %v4794_v22  ;;  %v1554_v2 = vsel %vm1108_vm3, %v1549_v0, 0  ;;  %v1505_v3 = vsel %vm1108_vm3, %v1500_v1, 0  ;;  %v4968_v22 = vld [vmem:[%s5498_s17] ss:$0 sm:$0xff] }
 0x33c   : > { %4049 = vmatpush3.bf16.xpose.msra.mxu1 %v1407_v63  ;;  %4055 = vmatpush3.bf16.xpose.msra.mxu0 %v1456_v62 }
 0x33d   : > { %4056 = vmatprep.mubr.msk.bf16.mxu0 %vm4536_vm2, %v4535_v13  ;;  %4050 = vmatprep.mubr.msk.bf16.mxu1 %vm4536_vm2, %v4535_v13 }
 0x33e   : > { %4060 = vmatprep.subr.bf16.mxu1 %v4535_v13  ;;  %4066 = vmatprep.subr.bf16.mxu0 %v4535_v13  ;;  %v1647_v4 = vpop.permute.xlu1 %1646  ;;  %v1598_v5 = vpop.permute.xlu0 %1597 }
 0x33f   : > { %v1652_v6 = vsel %vm1108_vm3, %v1647_v4, 0  ;;  %v1603_v7 = vsel %vm1108_vm3, %v1598_v5, 0 }
 0x342   : > { %v1745_v8 = vpop.permute.xlu1 %1744 }
 0x343   : > { %4051 = vmatmul.mubr.msk.bf16.vlgmr.msra.gmra.mrb[12].mxu1 %vm1108_vm3, %v4804_v31  ;;  %4057 = vmatmul.mubr.msk.bf16.vlgmr.msra.gmra.mrb[16].mxu0 %vm1108_vm3, %v4802_v30  ;;  %v1696_v9 = vpop.permute.xlu0 %1695  ;;  %v1750_v10 = vsel %vm1108_vm3, %v1745_v8, 0 }
 0x344   : > { %4061 = vmatpush3.bf16.xpose.msra.mxu1 %v1505_v3  ;;  %4067 = vmatpush3.bf16.xpose.msra.mxu0 %v1554_v2  ;;  %v1701_v11 = vsel %vm1108_vm3, %v1696_v9, 0 }
 0x345   : > { %4068 = vmatprep.mubr.msk.bf16.mxu0 %vm4536_vm2, %v4535_v13  ;;  %4062 = vmatprep.mubr.msk.bf16.mxu1 %vm4536_vm2, %v4535_v13 }
 0x346   : > { %4072 = vmatprep.subr.bf16.mxu1 %v4535_v13  ;;  %4078 = vmatprep.subr.bf16.mxu0 %v4535_v13  ;;  %v1843_v12 = vpop.permute.xlu1 %1842 }
 0x347   : > { %v1794_v14 = vpop.permute.xlu0 %1793  ;;  %v1848_v15 = vsel %vm1108_vm3, %v1843_v12, 0 }
 0x348   : > { %v1799_v16 = vsel %vm1108_vm3, %v1794_v14, 0 }
 0x34a   : > { %v2083_v17 = vpop.permute.xlu1 %2082 }
 0x34b   : > { %4063 = vmatmul.mubr.msk.bf16.vlgmr.msra.gmra.mrb[16].mxu1 %vm1108_vm3, %v4812_v35  ;;  %4069 = vmatmul.mubr.msk.bf16.vlgmr.msra.gmra.mrb[20].mxu0 %vm1108_vm3, %v4810_v34  ;;  %v2132_v18 = vpop.permute.xlu0 %2131  ;;  %v2089_v19 = vsel %vm2087_vm4, %v2083_v17, 0 }
 0x34c   : > { %4073 = vmatpush3.bf16.xpose.msra.mxu1 %v1603_v7  ;;  %4079 = vmatpush3.bf16.xpose.msra.mxu0 %v1652_v6  ;;  %v2137_v20 = vsel %vm2087_vm4, %v2132_v18, 0 }
 0x34d   : > { %4080 = vmatprep.mubr.msk.bf16.mxu0 %vm4536_vm2, %v4535_v13  ;;  %4074 = vmatprep.mubr.msk.bf16.mxu1 %vm4536_vm2, %v4535_v13 }
 0x34e   : > { %4084 = vmatprep.subr.bf16.mxu1 %v4535_v13  ;;  %4090 = vmatprep.subr.bf16.mxu0 %v4535_v13 }
 0x353   : > { %4075 = vmatmul.mubr.msk.bf16.vlgmr.msra.gmra.mrb[20].mxu1 %vm1108_vm3, %v4822_v43  ;;  %4081 = vmatmul.mubr.msk.bf16.vlgmr.msra.gmra.mrb[24].mxu0 %vm1108_vm3, %v4820_v42 }
 0x354   : > { %4085 = vmatpush3.bf16.xpose.msra.mxu1 %v1701_v11  ;;  %4091 = vmatpush3.bf16.xpose.msra.mxu0 %v1750_v10 }
 0x355   : > { %4092 = vmatprep.mubr.msk.bf16.mxu0 %vm4536_vm2, %v4535_v13  ;;  %4086 = vmatprep.mubr.msk.bf16.mxu1 %vm4536_vm2, %v4535_v13 }
 0x356   : > { %4096 = vmatprep.subr.bf16.mxu1 %v4535_v13  ;;  %4102 = vmatprep.subr.bf16.mxu0 %v4535_v13 }
 0x35b   : > { %4087 = vmatmul.mubr.msk.bf16.vlgmr.msra.gmra.mrb[24].mxu1 %vm1108_vm3, %v4832_v51  ;;  %4093 = vmatmul.mubr.msk.bf16.vlgmr.msra.gmra.mrb[28].mxu0 %vm1108_vm3, %v4830_v47 }
 0x35c   : > { %4097 = vmatpush3.bf16.xpose.msra.mxu1 %v1799_v16  ;;  %4103 = vmatpush3.bf16.xpose.msra.mxu0 %v1848_v15 }
 0x35d   : > { %4098 = vmatprep.mubr.msk.bf16.mxu1 %vm4536_vm2, %v4535_v13  ;;  %4104 = vmatprep.mubr.msk.bf16.mxu0 %vm4536_vm2, %v4535_v13 }
 0x35e   : > { %4108 = vmatprep.subr.bf16.mxu1 %v4535_v13  ;;  %4114 = vmatprep.subr.bf16.mxu0 %v4535_v13 }
 0x363   : > { %4099 = vmatmul.mubr.msk.bf16.vlgmr.msra.gmra.mrb[28].mxu1 %vm1108_vm3, %v4846_v55  ;;  %4105 = vmatmul.mubr.msk.bf16.vlgmr.msra.gmra.mrb[32].mxu0 %vm1108_vm3, %v4844_v54 }
 0x364   : > { %4109 = vmatpush3.bf16.msra.mxu1 %v2089_v19  ;;  %4115 = vmatpush3.bf16.msra.mxu0 %v2137_v20 }
 0x365   : > { %4116 = vmatprep.mubr.msk.bf16.mxu0 %vm4536_vm2, %v4535_v13  ;;  %4126 = vmatprep.subr.bf16.mxu0 %v4535_v13 }
 0x366   : > { %4110 = vmatprep.mubr.msk.bf16.mxu1 %vm4536_vm2, %v4535_v13  ;;  %4120 = vmatprep.subr.bf16.mxu1 %v4535_v13 }
 0x3a3   : > { %v1198_v23 = vpop.f32.mrb[4].mxu0 }
 0x3a4   : > { %v1149_v24 = vpop.f32.mrb[0].mxu1  ;;  %v4971_v25 = vadd.f32 %v4963_v21, %v1198_v23  ;;  %v4022_v26 = vpop.f32.mrb[5].mxu0 }
 0x3a5   : > { %v4974_v27 = vadd.f32 %v4968_v22, %v1149_v24  ;;  %v4016_v28 = vpop.f32.mrb[1].mxu1  ;;  %v1201_v29 = vpop.f32.mrb[6].mxu0 }
 0x3a6   : > { %v1152_v30 = vpop.f32.mrb[2].mxu1  ;;  %v4023_v31 = vpop.f32.mrb[7].mxu0  ;;  %v1893_v32 = vsel %vm1108_vm3, %v4971_v25, -inf }
 0x3a7   : > { %v4017_v33 = vpop.f32.mrb[3].mxu1  ;;  %1894 = vmax.xlane.f32.xlu1 %v1893_v32  ;;  %v1890_v35 = vsel %vm1108_vm3, %v4974_v27, -inf }
 0x3a8   : > { %1891 = vmax.xlane.f32.xlu0 %v1890_v35 }
 0x3ac   : > { %v1296_v37 = vpop.f32.mrb[8].mxu0 }
 0x3ad   : > { %v1247_v38 = vpop.f32.mrb[4].mxu1  ;;  %v4034_v40 = vpop.f32.mrb[9].mxu0  ;;  %v4994_v49 = vadd.f32 %v4988_v39, %v1296_v37 }
 0x3ae   : > { %v4991_v41 = vadd.f32 %v4983_v36, %v1247_v38  ;;  %v4028_v44 = vpop.f32.mrb[5].mxu1  ;;  %v1299_v45 = vpop.f32.mrb[10].mxu0 }
 0x3af   : > { %v1250_v46 = vpop.f32.mrb[6].mxu1  ;;  %v4035_v48 = vpop.f32.mrb[11].mxu0  ;;  %v1899_v53 = vsel %vm1108_vm3, %v4994_v49, -inf }
 0x3b0   : > { %v4029_v50 = vpop.f32.mrb[7].mxu1  ;;  %v1896_v52 = vsel %vm1108_vm3, %v4991_v41, -inf }
 0x3b1   : > { %1897 = vmax.xlane.f32.xlu0 %v1896_v52 }
 0x3b5   : > { %1900 = vmax.xlane.f32.xlu0 %v1899_v53 }
 0x40e   : > { %v1345_v56 = vpop.f32.mrb[8].mxu1  ;;  %v1394_v57 = vpop.f32.mrb[12].mxu0 }
 0x40f   : > { %v5001_v58 = vadd.f32 %v4968_v22, %v1345_v56  ;;  %v5004_v59 = vadd.f32 %v4963_v21, %v1394_v57  ;;  %v4040_v60 = vpop.f32.mrb[9].mxu1  ;;  %v4046_v61 = vpop.f32.mrb[13].mxu0 }
 0x410   : > { %v1348_v62 = vpop.f32.mrb[10].mxu1  ;;  %v1397_v63 = vpop.f32.mrb[14].mxu0 }
 0x411   : > { %v4041_v0 = vpop.f32.mrb[11].mxu1  ;;  %v4047_v1 = vpop.f32.mrb[15].mxu0  ;;  %v1905_v2 = vsel %vm1108_vm3, %v5004_v59, -inf  ;;  %v1902_v3 = vsel %vm1108_vm3, %v5001_v58, -inf }
 0x412   : > { %1906 = vmax.xlane.f32.xlu0 %v1905_v2  ;;  %1903 = vmax.xlane.f32.xlu1 %v1902_v3 }
 0x416   : > { %v1443_v4 = vpop.f32.mrb[12].mxu1  ;;  %v1492_v5 = vpop.f32.mrb[16].mxu0 }
 0x417   : > { %v5011_v6 = vadd.f32 %v4983_v36, %v1443_v4  ;;  %v5014_v7 = vadd.f32 %v4988_v39, %v1492_v5  ;;  %v4052_v8 = vpop.f32.mrb[13].mxu1  ;;  %v4058_v9 = vpop.f32.mrb[17].mxu0 }
 0x418   : > { %v1446_v10 = vpop.f32.mrb[14].mxu1  ;;  %v1495_v11 = vpop.f32.mrb[18].mxu0 }
 0x419   : > { %v4053_v12 = vpop.f32.mrb[15].mxu1  ;;  %v4059_v14 = vpop.f32.mrb[19].mxu0  ;;  %v1911_v15 = vsel %vm1108_vm3, %v5014_v7, -inf  ;;  %v1908_v16 = vsel %vm1108_vm3, %v5011_v6, -inf }
 0x41a   : > { %1912 = vmax.xlane.f32.xlu0 %v1911_v15  ;;  %1909 = vmax.xlane.f32.xlu1 %v1908_v16 }
 0x41e   : > { %v1541_v17 = vpop.f32.mrb[16].mxu1  ;;  %v1590_v18 = vpop.f32.mrb[20].mxu0 }
 0x41f   : > { %v5021_v19 = vadd.f32 %v4968_v22, %v1541_v17  ;;  %v5024_v20 = vadd.f32 %v4963_v21, %v1590_v18  ;;  %v4064_v23 = vpop.f32.mrb[17].mxu1  ;;  %v4070_v24 = vpop.f32.mrb[21].mxu0 }
 0x420   : > { %v1544_v26 = vpop.f32.mrb[18].mxu1  ;;  %v1593_v28 = vpop.f32.mrb[22].mxu0 }
 0x421   : > { %v4065_v29 = vpop.f32.mrb[19].mxu1  ;;  %v4071_v30 = vpop.f32.mrb[23].mxu0  ;;  %v1917_v31 = vsel %vm1108_vm3, %v5024_v20, -inf  ;;  %v1914_v32 = vsel %vm1108_vm3, %v5021_v19, -inf }
 0x422   : > { %1918 = vmax.xlane.f32.xlu0 %v1917_v31  ;;  %1915 = vmax.xlane.f32.xlu1 %v1914_v32  ;;  %v5060_v23 = vpop.permute.xlu1 %2179 }
 0x426   : > { %v1639_v33 = vpop.f32.mrb[20].mxu1  ;;  %v1688_v35 = vpop.f32.mrb[24].mxu0 }
 0x427   : > { %v5031_v37 = vadd.f32 %v4983_v36, %v1639_v33  ;;  %v5034_v38 = vadd.f32 %v4988_v39, %v1688_v35  ;;  %v4076_v40 = vpop.f32.mrb[21].mxu1  ;;  %v4082_v44 = vpop.f32.mrb[25].mxu0 }
 0x428   : > { %v1642_v45 = vpop.f32.mrb[22].mxu1  ;;  %v1691_v46 = vpop.f32.mrb[26].mxu0 }
 0x429   : > { %v4077_v48 = vpop.f32.mrb[23].mxu1  ;;  %v4083_v50 = vpop.f32.mrb[27].mxu0  ;;  %v1923_v52 = vsel %vm1108_vm3, %v5034_v38, -inf  ;;  %v1920_v53 = vsel %vm1108_vm3, %v5031_v37, -inf }
 0x42a   : > { %1924 = vmax.xlane.f32.xlu0 %v1923_v52  ;;  %1921 = vmax.xlane.f32.xlu1 %v1920_v53 }
 0x42e   : > { %v1737_v56 = vpop.f32.mrb[24].mxu1  ;;  %v1786_v57 = vpop.f32.mrb[28].mxu0 }
 0x42f   : > { %v5041_v60 = vadd.f32 %v4968_v22, %v1737_v56  ;;  %v5044_v61 = vadd.f32 %v4963_v21, %v1786_v57  ;;  %v4088_v62 = vpop.f32.mrb[25].mxu1  ;;  %v4094_v63 = vpop.f32.mrb[29].mxu0 }
 0x430   : > { %v1740_v0 = vpop.f32.mrb[26].mxu1  ;;  %v1789_v1 = vpop.f32.mrb[30].mxu0 }
 0x431   : > { %v4089_v2 = vpop.f32.mrb[27].mxu1  ;;  %v4095_v3 = vpop.f32.mrb[31].mxu0  ;;  %v1929_v4 = vsel %vm1108_vm3, %v5044_v61, -inf  ;;  %v1926_v5 = vsel %vm1108_vm3, %v5041_v60, -inf }
 0x432   : > { %1930 = vmax.xlane.f32.xlu0 %v1929_v4  ;;  %1927 = vmax.xlane.f32.xlu1 %v1926_v5 }
 0x436   : > { %v1835_v8 = vpop.f32.mrb[28].mxu1  ;;  %v1884_v22 = vpop.f32.mrb[32].mxu0 }
 0x437   : > { %v5051_v9 = vadd.f32 %v4983_v36, %v1835_v8  ;;  %v5054_v21 = vadd.f32 %v4988_v39, %v1884_v22  ;;  %v4100_v10 = vpop.f32.mrb[29].mxu1  ;;  %v4106_v11 = vpop.f32.mrb[33].mxu0 }
 0x438   : > { %v1838_v12 = vpop.f32.mrb[30].mxu1  ;;  %v1887_v14 = vpop.f32.mrb[34].mxu0 }
 0x439   : > { %v4101_v15 = vpop.f32.mrb[31].mxu1  ;;  %v4107_v16 = vpop.f32.mrb[35].mxu0  ;;  %v1935_v17 = vsel %vm1108_vm3, %v5054_v21, -inf  ;;  %v1932_v18 = vsel %vm1108_vm3, %v5051_v9, -inf }
 0x43a   : > { %1936 = vmax.xlane.f32.xlu0 %v1935_v17  ;;  %1933 = vmax.xlane.f32.xlu1 %v1932_v18  ;;  %v5062_v36 = vpop.permute.xlu0 %2227  ;;  %v5064_v39 = vpop.permute.xlu1 %2275 }
 0x43e   : > { %v5066_v24 = vpop.permute.xlu0 %2419  ;;  %v5070_v26 = vpop.permute.xlu1 %2371 }
 0x442   : > { %v5072_v28 = vpop.permute.xlu0 %2323  ;;  %v5078_v30 = vpop.permute.xlu1 %2467 }
 0x446   : > { %v1892_v29 = vpop.xlane.xlu0 %1891  ;;  %v1895_v32 = vpop.xlane.xlu1 %1894 }
 0x447   : > { %v1939_v33 = vsub.f32 %v4971_v25, %v1895_v32 }
 0x449   : > { %v1956_v40 = vmul.f32 1.442695, %v1939_v33 }
 0x44a   : > { %v1898_v31 = vpop.xlane.xlu0 %1897 }
 0x44b   : > { %2563 = vrot.lane.b32.xlu1 %v4822_v43, %s4539_s24  ;;  %v1938_v43 = vsub.f32 %v4974_v27, %v1892_v29  ;;  %4379 = vpow2.f32 %v1956_v40 }
 0x44d   : > { %v1954_v45 = vmul.f32 1.442695, %v1938_v43 }
 0x44e   : > { %v1901_v35 = vpop.xlane.xlu0 %1900 }
 0x44f   : > { %2611 = vrot.lane.b32.xlu1 %v4820_v42, %s4539_s24  ;;  %v1941_v44 = vsub.f32 %v4994_v49, %v1901_v35  ;;  %v1940_v42 = vsub.f32 %v4991_v41, %v1898_v31  ;;  %4381 = vpow2.f32 %v1954_v45 }
 0x450   : > { %2515 = vrot.lane.b32.xlu0 %v4810_v34, %s4539_s24 }
 0x451   : > { %v1960_v46 = vmul.f32 1.442695, %v1941_v44  ;;  %v1958_v48 = vmul.f32 1.442695, %v1940_v42 }
 0x453   : > { %4383 = vpow2.f32 %v1960_v46 }
 0x454   : > { %4385 = vpow2.f32 %v1958_v48 }
 0x455   : > { %v5084_v34 = vpop.eup %4379 }
 0x456   : > { %v1989_v25 = vsel %vm1108_vm3, %v5084_v34, 0.0 }
 0x459   : > { %v5086_v50 = vpop.eup %4381 }
 0x45a   : > { %v1986_v49 = vsel %vm1108_vm3, %v5086_v50, 0.0 }
 0x45d   : > { %v5090_v27 = vpop.eup %4383 }
 0x45e   : > { %v1995_v41 = vsel %vm1108_vm3, %v5090_v27, 0.0  ;;  %v5096_v52 = vpop.eup %4385 }
 0x45f   : > { %v1992_v53 = vsel %vm1108_vm3, %v5096_v52, 0.0 }
 0x46f   : > { %1990 = vadd.xlane.f32.xlu0 %v1989_v25 }
 0x473   : > { %1987 = vadd.xlane.f32.xlu1 %v1986_v49  ;;  %1996 = vadd.xlane.f32.xlu0 %v1995_v41 }
 0x477   : > { %1993 = vadd.xlane.f32.xlu1 %v1992_v53 }
 0x49f   : > { %v1904_v56 = vpop.xlane.xlu1 %1903  ;;  %v1907_v57 = vpop.xlane.xlu0 %1906 }
 0x4a0   : > { %v1942_v62 = vsub.f32 %v5001_v58, %v1904_v56  ;;  %v1943_v63 = vsub.f32 %v5004_v59, %v1907_v57 }
 0x4a2   : > { %v1962_v0 = vmul.f32 1.442695, %v1942_v62  ;;  %v1964_v1 = vmul.f32 1.442695, %v1943_v63 }
 0x4a4   : > { %4387 = vpow2.f32 %v1962_v0 }
 0x4a5   : > { %4389 = vpow2.f32 %v1964_v1 }
 0x4a7   : > { %v1910_v2 = vpop.xlane.xlu1 %1909  ;;  %v1913_v3 = vpop.xlane.xlu0 %1912 }
 0x4a8   : > { %v1944_v4 = vsub.f32 %v5011_v6, %v1910_v2  ;;  %v1945_v5 = vsub.f32 %v5014_v7, %v1913_v3 }
 0x4aa   : > { %v1966_v8 = vmul.f32 1.442695, %v1944_v4  ;;  %v1968_v22 = vmul.f32 1.442695, %v1945_v5 }
 0x4ac   : > { %4391 = vpow2.f32 %v1966_v8 }
 0x4ad   : > { %4393 = vpow2.f32 %v1968_v22 }
 0x4ae   : > { %v5104_v10 = vpop.eup %4387 }
 0x4af   : > { %v5106_v11 = vpop.eup %4389  ;;  %v1916_v58 = vpop.xlane.xlu1 %1915  ;;  %v1998_v12 = vsel %vm1108_vm3, %v5104_v10, 0.0 }
 0x4b0   : > { %v1919_v59 = vpop.xlane.xlu0 %1918  ;;  %v1946_v14 = vsub.f32 %v5021_v19, %v1916_v58  ;;  %1999 = vadd.xlane.f32.xlu1 %v1998_v12  ;;  %v2001_v6 = vsel %vm1108_vm3, %v5106_v11, 0.0 }
 0x4b1   : > { %v1947_v15 = vsub.f32 %v5024_v20, %v1919_v59  ;;  %2002 = vadd.xlane.f32.xlu0 %v2001_v6 }
 0x4b2   : > { %v1970_v7 = vmul.f32 1.442695, %v1946_v14 }
 0x4b3   : > { %v1972_v16 = vmul.f32 1.442695, %v1947_v15 }
 0x4b4   : > { %4395 = vpow2.f32 %v1970_v7 }
 0x4b5   : > { %4397 = vpow2.f32 %v1972_v16 }
 0x4b6   : > { %v5114_v17 = vpop.eup %4391 }
 0x4b7   : > { %v5116_v18 = vpop.eup %4393  ;;  %v1922_v29 = vpop.xlane.xlu1 %1921  ;;  %v2004_v19 = vsel %vm1108_vm3, %v5114_v17, 0.0 }
 0x4b8   : > { %v1925_v31 = vpop.xlane.xlu0 %1924  ;;  %v1948_v20 = vsub.f32 %v5031_v37, %v1922_v29  ;;  %2005 = vadd.xlane.f32.xlu1 %v2004_v19  ;;  %v2007_v33 = vsel %vm1108_vm3, %v5116_v18, 0.0  ;;  %v2233_v19 = vsel %vm2087_vm4, %v5062_v36, 0 }
 0x4b9   : > { %v1949_v32 = vsub.f32 %v5034_v38, %v1925_v31  ;;  %2008 = vadd.xlane.f32.xlu0 %v2007_v33 }
 0x4ba   : > { %v1974_v35 = vmul.f32 1.442695, %v1948_v20 }
 0x4bb   : > { %v1976_v43 = vmul.f32 1.442695, %v1949_v32 }
 0x4bc   : > { %4399 = vpow2.f32 %v1974_v35  ;;  %v2185_v35 = vsel %vm2087_vm4, %v5060_v23, 0 }
 0x4bd   : > { %4401 = vpow2.f32 %v1976_v43 }
 0x4be   : > { %v5124_v40 = vpop.eup %4395 }
 0x4bf   : > { %v5126_v44 = vpop.eup %4397  ;;  %v2010_v45 = vsel %vm1108_vm3, %v5124_v40, 0.0  ;;  %v1928_v25 = vpop.xlane.xlu1 %1927 }
 0x4c0   : > { %2011 = vadd.xlane.f32.xlu1 %v2010_v45  ;;  %v2013_v37 = vsel %vm1108_vm3, %v5126_v44, 0.0  ;;  %v1931_v49 = vpop.xlane.xlu0 %1930  ;;  %v1950_v41 = vsub.f32 %v5041_v60, %v1928_v25 }
 0x4c1   : > { %2014 = vadd.xlane.f32.xlu0 %v2013_v37  ;;  %v1951_v53 = vsub.f32 %v5044_v61, %v1931_v49  ;;  %v2377_v49 = vsel %vm2087_vm4, %v5070_v26, 0 }
 0x4c2   : > { %v1978_v62 = vmul.f32 1.442695, %v1950_v41 }
 0x4c3   : > { %v1980_v0 = vmul.f32 1.442695, %v1951_v53  ;;  %v2425_v53 = vsel %vm2087_vm4, %v5066_v24, 0 }
 0x4c4   : > { %4403 = vpow2.f32 %v1978_v62 }
 0x4c5   : > { %4405 = vpow2.f32 %v1980_v0 }
 0x4c6   : > { %v5132_v38 = vpop.eup %4399 }
 0x4c7   : > { %v5134_v42 = vpop.eup %4401  ;;  %v2016_v46 = vsel %vm1108_vm3, %v5132_v38, 0.0  ;;  %v1934_v56 = vpop.xlane.xlu1 %1933 }
 0x4c8   : > { %2017 = vadd.xlane.f32.xlu1 %v2016_v46  ;;  %v2019_v48 = vsel %vm1108_vm3, %v5134_v42, 0.0  ;;  %v1937_v57 = vpop.xlane.xlu0 %1936  ;;  %v1952_v63 = vsub.f32 %v5051_v9, %v1934_v56 }
 0x4c9   : > { %2020 = vadd.xlane.f32.xlu0 %v2019_v48  ;;  %v1953_v1 = vsub.f32 %v5054_v21, %v1937_v57 }
 0x4ca   : > { %v1982_v2 = vmul.f32 1.442695, %v1952_v63  ;;  %v2473_v63 = vsel %vm2087_vm4, %v5078_v30, 0 }
 0x4cc   : > { %4407 = vpow2.f32 %v1982_v2  ;;  %v5150_v3 = vpop.permute.xlu0 %2515 }
 0x4ce   : > { %v5152_v60 = vpop.eup %4403 }
 0x4cf   : > { %v5154_v61 = vpop.eup %4405  ;;  %v2022_v21 = vsel %vm1108_vm3, %v5152_v60, 0.0 }
 0x4d0   : > { %v2025_v8 = vsel %vm1108_vm3, %v5154_v61, 0.0 }
 0x4d6   : > { %v5160_v5 = vpop.eup %4407 }
 0x4d7   : > { %v2028_v12 = vsel %vm1108_vm3, %v5160_v5, 0.0 }
 0x4d9   : > { %2707 = vrot.lane.b32.xlu1 %v4830_v47, %s4539_s24  ;;  %v1984_v47 = vmul.f32 1.442695, %v1953_v1  ;;  %v2521_v1 = vsel %vm2087_vm4, %v5150_v3, 0 }
 0x4db   : > { %4409 = vpow2.f32 %v1984_v47 }
 0x4df   : > { %2659 = vrot.lane.b32.xlu0 %v4832_v51, %s4539_s24  ;;  %v5148_v51 = vpop.permute.xlu1 %2563 }
 0x4e3   : > { %v5156_v4 = vpop.permute.xlu1 %2611 }
 0x4e5   : > { %v5164_v22 = vpop.eup %4409 }
 0x4e6   : > { %v2031_v14 = vsel %vm1108_vm3, %v5164_v22, 0.0 }
 0x4fc   : > { %v1991_v9 = vpop.xlane.xlu0 %1990 }
 0x4fd   : > { %4411 = vrcp.f32 %v1991_v9  ;;  %2023 = vadd.xlane.f32.xlu1 %v2022_v21  ;;  %v2569_v21 = vsel %vm2087_vm4, %v5148_v51, 0 }
 0x4fe   : > { %2026 = vadd.xlane.f32.xlu0 %v2025_v8  ;;  %v2617_v8 = vsel %vm2087_vm4, %v5156_v4, 0 }
 0x500   : > { %v1988_v58 = vpop.xlane.xlu1 %1987  ;;  %v1997_v59 = vpop.xlane.xlu0 %1996 }
 0x501   : > { %4413 = vrcp.f32 %v1988_v58  ;;  %2029 = vadd.xlane.f32.xlu1 %v2028_v12 }
 0x502   : > { %4415 = vrcp.f32 %v1997_v59  ;;  %2032 = vadd.xlane.f32.xlu0 %v2031_v14 }
 0x504   : > { %v1994_v15 = vpop.xlane.xlu1 %1993 }
 0x505   : > { %4417 = vrcp.f32 %v1994_v15 }
 0x507   : > { %v4412_v6 = vpop.eup %4411 }
 0x508   : > { %v2051_v7 = vmul.f32 %v4412_v6, %v5084_v34 }
 0x50a   : > { %v2067_v16 = vpack.c.bf16 %v2051_v7, %v2051_v7 }
 0x50b   : > { %v4414_v29 = vpop.eup %4413 }
 0x50c   : > { %v4416_v31 = vpop.eup %4415  ;;  %v2050_v20 = vmul.f32 %v4414_v29, %v5086_v50  ;;  %4117 = vmatmul.mubr.msk.bf16.vlgmr.msra.gmra.mrb[36].mxu0 %vm1108_vm3, %v2067_v16 }
 0x50d   : > { %4127 = vmatpush3.bf16.msra.mxu0 %v2233_v19  ;;  %4128 = vmatprep.mubr.msk.bf16.mxu0 %vm4536_vm2, %v4535_v13  ;;  %v2053_v32 = vmul.f32 %v4416_v31, %v5090_v27  ;;  %v2329_v27 = vsel %vm2087_vm4, %v5072_v28, 0 }
 0x50e   : > { %v2066_v33 = vpack.c.bf16 %v2050_v20, %v2050_v20  ;;  %4138 = vmatprep.subr.bf16.mxu0 %v4535_v13 }
 0x50f   : > { %v4418_v34 = vpop.eup %4417  ;;  %v2069_v50 = vpack.c.bf16 %v2053_v32, %v2053_v32 }
 0x510   : > { %4111 = vmatmul.mubr.msk.bf16.vlgmr.msra.gmra.mrb[32].mxu1 %vm1108_vm3, %v2066_v33  ;;  %v2052_v36 = vmul.f32 %v4418_v34, %v5096_v52  ;;  %v2281_v52 = vsel %vm2087_vm4, %v5064_v39, 0 }
 0x511   : > { %4121 = vmatpush3.bf16.msra.mxu1 %v2185_v35  ;;  %4122 = vmatprep.mubr.msk.bf16.mxu1 %vm4536_vm2, %v4535_v13 }
 0x512   : > { %2803 = vrot.lane.b32.xlu1 %v4844_v54, %s4539_s24  ;;  %4132 = vmatprep.subr.bf16.mxu1 %v4535_v13  ;;  %v2068_v23 = vpack.c.bf16 %v2052_v36, %v2052_v36 }
 0x514   : > { %4129 = vmatmul.mubr.msk.bf16.vlgmr.msra.gmra.mrb[40].mxu0 %vm1108_vm3, %v2069_v50 }
 0x515   : > { %4139 = vmatpush3.bf16.msra.mxu0 %v2329_v27  ;;  %4140 = vmatprep.mubr.msk.bf16.mxu0 %vm4536_vm2, %v4535_v13 }
 0x516   : > { %4150 = vmatprep.subr.bf16.mxu0 %v4535_v13 }
 0x518   : > { %2755 = vrot.lane.b32.xlu0 %v4846_v55, %s4539_s24  ;;  %4123 = vmatmul.mubr.msk.bf16.vlgmr.msra.gmra.mrb[36].mxu1 %vm1108_vm3, %v2068_v23  ;;  %s4540_s24 = smov 8  }
 0x519   : > { %4133 = vmatpush3.bf16.msra.mxu1 %v2281_v52  ;;  %4134 = vmatprep.mubr.msk.bf16.mxu1 %vm4536_vm2, %v4535_v13 }
 0x51a   : > { %4144 = vmatprep.subr.bf16.mxu1 %v4535_v13 }
 0x53d   : > { %v2000_v54 = vpop.xlane.xlu1 %1999 }
 0x53e   : > { %4419 = vrcp.f32 %v2000_v54  ;;  %v2003_v28 = vpop.xlane.xlu0 %2002 }
 0x53f   : > { %4421 = vrcp.f32 %v2003_v28 }
 0x545   : > { %v2006_v43 = vpop.xlane.xlu1 %2005 }
 0x546   : > { %4423 = vrcp.f32 %v2006_v43  ;;  %v2009_v45 = vpop.xlane.xlu0 %2008 }
 0x547   : > { %4425 = vrcp.f32 %v2009_v45 }
 0x548   : > { %v4420_v39 = vpop.eup %4419 }
 0x549   : > { %v4422_v37 = vpop.eup %4421  ;;  %v2054_v55 = vmul.f32 %v4420_v39, %v5104_v10 }
 0x54a   : > { %v2055_v46 = vmul.f32 %v4422_v37, %v5106_v11 }
 0x54b   : > { %v2070_v48 = vpack.c.bf16 %v2054_v55, %v2054_v55 }
 0x54c   : > { %v2071_v25 = vpack.c.bf16 %v2055_v46, %v2055_v46 }
 0x54d   : > { %4135 = vmatmul.mubr.msk.bf16.vlgmr.msra.gmra.mrb[40].mxu1 %vm1108_vm3, %v2070_v48  ;;  %v2012_v41 = vpop.xlane.xlu1 %2011 }
 0x54e   : > { %4145 = vmatpush3.bf16.msra.mxu1 %v2377_v49  ;;  %4427 = vrcp.f32 %v2012_v41  ;;  %4141 = vmatmul.mubr.msk.bf16.vlgmr.msra.gmra.mrb[44].mxu0 %vm1108_vm3, %v2071_v25  ;;  %v2015_v56 = vpop.xlane.xlu0 %2014 }
 0x54f   : > { %4151 = vmatpush3.bf16.msra.mxu0 %v2425_v53  ;;  %4429 = vrcp.f32 %v2015_v56  ;;  %4146 = vmatprep.mubr.msk.bf16.mxu1 %vm4536_vm2, %v4535_v13 }
 0x550   : > { %v4424_v10 = vpop.eup %4423  ;;  %4152 = vmatprep.mubr.msk.bf16.mxu0 %vm4536_vm2, %v4535_v13  ;;  %4156 = vmatprep.subr.bf16.mxu1 %v4535_v13 }
 0x551   : > { %v4426_v26 = vpop.eup %4425  ;;  %v2056_v11 = vmul.f32 %v4424_v10, %v5114_v17  ;;  %4162 = vmatprep.subr.bf16.mxu0 %v4535_v13 }
 0x552   : > { %v2057_v24 = vmul.f32 %v4426_v26, %v5116_v18 }
 0x553   : > { %v2072_v57 = vpack.c.bf16 %v2056_v11, %v2056_v11 }
 0x554   : > { %v2073_v62 = vpack.c.bf16 %v2057_v24, %v2057_v24 }
 0x555   : > { %4147 = vmatmul.mubr.msk.bf16.vlgmr.msra.gmra.mrb[44].mxu1 %vm1108_vm3, %v2072_v57  ;;  %v2018_v0 = vpop.xlane.xlu1 %2017 }
 0x556   : > { %4157 = vmatpush3.bf16.msra.mxu1 %v2473_v63  ;;  %4431 = vrcp.f32 %v2018_v0  ;;  %4153 = vmatmul.mubr.msk.bf16.vlgmr.msra.gmra.mrb[48].mxu0 %vm1108_vm3, %v2073_v62  ;;  %v2021_v17 = vpop.xlane.xlu0 %2020 }
 0x557   : > { %4163 = vmatpush3.bf16.msra.mxu0 %v2521_v1  ;;  %4433 = vrcp.f32 %v2021_v17  ;;  %4158 = vmatprep.mubr.msk.bf16.mxu1 %vm4536_vm2, %v4535_v13 }
 0x558   : > { %v4428_v18 = vpop.eup %4427  ;;  %4164 = vmatprep.mubr.msk.bf16.mxu0 %vm4536_vm2, %v4535_v13  ;;  %4168 = vmatprep.subr.bf16.mxu1 %v4535_v13 }
 0x559   : > { %v4430_v30 = vpop.eup %4429  ;;  %v2058_v2 = vmul.f32 %v4428_v18, %v5124_v40  ;;  %4174 = vmatprep.subr.bf16.mxu0 %v4535_v13  ;;  %v2708_v59 = vpop.permute.xlu1 %2707 }
 0x55a   : > { %v2059_v47 = vmul.f32 %v4430_v30, %v5126_v44  ;;  %v2660_v58 = vpop.permute.xlu0 %2659  ;;  %v2713_v6 = vsel %vm2087_vm4, %v2708_v59, 0 }
 0x55b   : > { %v2074_v3 = vpack.c.bf16 %v2058_v2, %v2058_v2  ;;  %v2665_v15 = vsel %vm2087_vm4, %v2660_v58, 0 }
 0x55c   : > { %v2075_v9 = vpack.c.bf16 %v2059_v47, %v2059_v47 }
 0x55d   : > { %4159 = vmatmul.mubr.msk.bf16.vlgmr.msra.gmra.mrb[48].mxu1 %vm1108_vm3, %v2074_v3 }
 0x55e   : > { %4165 = vmatmul.mubr.msk.bf16.vlgmr.msra.gmra.mrb[52].mxu0 %vm1108_vm3, %v2075_v9  ;;  %4169 = vmatpush3.bf16.msra.mxu1 %v2569_v21 }
 0x55f   : > { %4175 = vmatpush3.bf16.msra.mxu0 %v2617_v8  ;;  %4170 = vmatprep.mubr.msk.bf16.mxu1 %vm4536_vm2, %v4535_v13 }
 0x560   : > { %v4432_v40 = vpop.eup %4431  ;;  %4176 = vmatprep.mubr.msk.bf16.mxu0 %vm4536_vm2, %v4535_v13  ;;  %4180 = vmatprep.subr.bf16.mxu1 %v4535_v13 }
 0x561   : > { %v4434_v44 = vpop.eup %4433  ;;  %v2060_v51 = vmul.f32 %v4432_v40, %v5132_v38  ;;  %4186 = vmatprep.subr.bf16.mxu0 %v4535_v13 }
 0x562   : > { %v2061_v4 = vmul.f32 %v4434_v44, %v5134_v42 }
 0x563   : > { %v2076_v12 = vpack.c.bf16 %v2060_v51, %v2060_v51 }
 0x564   : > { %v2077_v14 = vpack.c.bf16 %v2061_v4, %v2061_v4 }
 0x565   : > { %4171 = vmatmul.mubr.msk.bf16.vlgmr.msra.gmra.mrb[52].mxu1 %vm1108_vm3, %v2076_v12 }
 0x566   : > { %4177 = vmatmul.mubr.msk.bf16.vlgmr.msra.gmra.mrb[56].mxu0 %vm1108_vm3, %v2077_v14  ;;  %4181 = vmatpush3.bf16.msra.mxu1 %v2665_v15 }
 0x567   : > { %4187 = vmatpush3.bf16.msra.mxu0 %v2713_v6  ;;  %4182 = vmatprep.mubr.msk.bf16.mxu1 %vm4536_vm2, %v4535_v13 }
 0x568   : > { %4188 = vmatprep.mubr.msk.bf16.mxu0 %vm4536_vm2, %v4535_v13  ;;  %4192 = vmatprep.subr.bf16.mxu1 %v4535_v13 }
 0x569   : > { %4198 = vmatprep.subr.bf16.mxu0 %v4535_v13 }
 0x58a   : > { %v2024_v38 = vpop.xlane.xlu1 %2023 }
 0x58b   : > { %4435 = vrcp.f32 %v2024_v38  ;;  %v2027_v42 = vpop.xlane.xlu0 %2026 }
 0x58c   : > { %4437 = vrcp.f32 %v2027_v42 }
 0x58e   : > { %v2030_v7 = vpop.xlane.xlu1 %2029 }
 0x58f   : > { %4439 = vrcp.f32 %v2030_v7  ;;  %v2033_v16 = vpop.xlane.xlu0 %2032 }
 0x590   : > { %4441 = vrcp.f32 %v2033_v16 }
 0x592   : > { %v2804_v33 = vpop.permute.xlu1 %2803 }
 0x593   : > { %v2756_v32 = vpop.permute.xlu0 %2755  ;;  %v2809_v23 = vsel %vm2087_vm4, %v2804_v33, 0  ;;  %v4372_v33 = vld [vmem:[%s4691_s2 + $0x8] sm:$0xff]  }
 0x594   : > { %v2761_v27 = vsel %vm2087_vm4, %v2756_v32, 0  ;;  %v4371_v32 = vld [vmem:[%s4691_s2] sm:$0xff]  }
 0x595   : > { %v4436_v29 = vpop.eup %4435 }
 0x596   : > { %v4438_v31 = vpop.eup %4437  ;;  %v2062_v19 = vmul.f32 %v4436_v29, %v5152_v60 }
 0x597   : > { %v2063_v20 = vmul.f32 %v4438_v31, %v5154_v61 }
 0x598   : > { %v2078_v34 = vpack.c.bf16 %v2062_v19, %v2062_v19 }
 0x599   : > { %v4440_v35 = vpop.eup %4439  ;;  %v2079_v36 = vpack.c.bf16 %v2063_v20, %v2063_v20 }
 0x59a   : > { %v4442_v50 = vpop.eup %4441  ;;  %4183 = vmatmul.mubr.msk.bf16.vlgmr.msra.gmra.mrb[56].mxu1 %vm1108_vm3, %v2078_v34  ;;  %v2064_v52 = vmul.f32 %v4440_v35, %v5160_v5 }
 0x59b   : > { %4189 = vmatmul.mubr.msk.bf16.vlgmr.msra.gmra.mrb[60].mxu0 %vm1108_vm3, %v2079_v36  ;;  %4193 = vmatpush3.bf16.msra.mxu1 %v2761_v27  ;;  %v2065_v60 = vmul.f32 %v4442_v50, %v5164_v22 }
 0x59c   : > { %4199 = vmatpush3.bf16.msra.mxu0 %v2809_v23  ;;  %4194 = vmatprep.mubr.msk.bf16.mxu1 %vm4536_vm2, %v4535_v13  ;;  %v2080_v61 = vpack.c.bf16 %v2064_v52, %v2064_v52 }
 0x59d   : > { %4200 = vmatprep.mubr.msk.bf16.mxu0 %vm4536_vm2, %v4535_v13  ;;  %v2081_v54 = vpack.c.bf16 %v2065_v60, %v2065_v60  ;;  %4204 = vmatprep.subr.bf16.mxu1 %v4371_v32 }
 0x5a2   : > { %4195 = vmatmul.mubr.msk.bf16.vlgmr.msra.gmra.mrb[60].mxu1 %vm1108_vm3, %v2080_v61 }
 0x5a3   : > { %4201 = vmatmul.mubr.msk.bf16.vlgmr.msra.gmra.mrb[64].mxu0 %vm1108_vm3, %v2081_v54  ;;  %4205 = vmatpush3.bf16.msra.mxu1 %v4371_v32  ;;  %v4468_v32 = vld [vmem:[#allocation2 + $0x8] sm:$0xff] }
 0x5a4   : > { %4206 = vmatprep.subr.bf16.mxu1 %v4372_v33 }
 0x5a7   : > { %4207 = vmatpush3.bf16.msra.mxu1 %v4372_v33 }
 0x5df   : > { %v5270_v28 = vpop.f32.mrb[36].mxu0 }
 0x5e0   : > { %v4118_v43 = vpop.f32.mrb[37].mxu0 }
 0x5e1   : > { %v2176_v45 = vpop.f32.mrb[38].mxu0 }
 0x5e2   : > { %v4119_v5 = vpop.f32.mrb[39].mxu0 }
 0x5e3   : > { %v5272_v39 = vpop.f32.mrb[32].mxu1 }
 0x5e4   : > { %v4112_v37 = vpop.f32.mrb[33].mxu1 }
 0x5e5   : > { %v2128_v55 = vpop.f32.mrb[34].mxu1 }
 0x5e6   : > { %v4113_v46 = vpop.f32.mrb[35].mxu1 }
 0x5e7   : > { %v5274_v22 = vpop.f32.mrb[40].mxu0 }
 0x5e8   : > { %v4130_v48 = vpop.f32.mrb[41].mxu0 }
 0x5e9   : > { %v2272_v13 = vpop.f32.mrb[42].mxu0 }
 0x5ea   : > { %v4131_v25 = vpop.f32.mrb[43].mxu0 }
 0x5eb   : > { %v5276_v49 = vpop.f32.mrb[36].mxu1 }
 0x5ec   : > { %v4124_v41 = vpop.f32.mrb[37].mxu1 }
 0x5ed   : > { %v2224_v53 = vpop.f32.mrb[38].mxu1 }
 0x5ee   : > { %v4125_v56 = vpop.f32.mrb[39].mxu1 }
 0x620   : > { %v2317_v10 = vpop.f32.mrb[40].mxu1 }
 0x621   : > { %v2365_v26 = vpop.f32.mrb[44].mxu0  ;;  %v4136_v11 = vpop.f32.mrb[41].mxu1 }
 0x622   : > { %v4339_v24 = vpack.i.bf16 %v2365_v26, %v2317_v10  ;;  %v4142_v57 = vpop.f32.mrb[45].mxu0  ;;  %v2320_v62 = vpop.f32.mrb[42].mxu1 }
 0x623   : > { %v2368_v63 = vpop.f32.mrb[46].mxu0  ;;  %v4137_v0 = vpop.f32.mrb[43].mxu1 }
 0x624   : > { %4340 = vrot.lane.b32.xlu0 %v4339_v24, %s4540_s24  ;;  %v4143_v1 = vpop.f32.mrb[47].mxu0 }
 0x628   : > { %v2413_v17 = vpop.f32.mrb[44].mxu1 }
 0x629   : > { %v2461_v18 = vpop.f32.mrb[48].mxu0  ;;  %v4148_v30 = vpop.f32.mrb[45].mxu1 }
 0x62a   : > { %v4344_v2 = vpack.i.bf16 %v2461_v18, %v2413_v17  ;;  %v4154_v47 = vpop.f32.mrb[49].mxu0  ;;  %v2416_v3 = vpop.f32.mrb[46].mxu1 }
 0x62b   : > { %v2464_v9 = vpop.f32.mrb[50].mxu0  ;;  %v4149_v21 = vpop.f32.mrb[47].mxu1 }
 0x62c   : > { %4345 = vrot.lane.b32.xlu1 %v4344_v2, %s4540_s24  ;;  %v4155_v8 = vpop.f32.mrb[51].mxu0 }
 0x630   : > { %v2509_v40 = vpop.f32.mrb[48].mxu1 }
 0x631   : > { %v2557_v44 = vpop.f32.mrb[52].mxu0  ;;  %v4160_v51 = vpop.f32.mrb[49].mxu1 }
 0x632   : > { %v4349_v4 = vpack.i.bf16 %v2557_v44, %v2509_v40  ;;  %v4166_v58 = vpop.f32.mrb[53].mxu0  ;;  %v2512_v59 = vpop.f32.mrb[50].mxu1 }
 0x633   : > { %v2560_v12 = vpop.f32.mrb[54].mxu0  ;;  %v4161_v14 = vpop.f32.mrb[51].mxu1 }
 0x634   : > { %4350 = vrot.lane.b32.xlu0 %v4349_v4, %s4541_s21  ;;  %v4167_v15 = vpop.f32.mrb[55].mxu0 }
 0x638   : > { %v2605_v6 = vpop.f32.mrb[52].mxu1 }
 0x639   : > { %v2653_v38 = vpop.f32.mrb[56].mxu0  ;;  %v4172_v42 = vpop.f32.mrb[53].mxu1 }
 0x63a   : > { %v4354_v7 = vpack.i.bf16 %v2653_v38, %v2605_v6  ;;  %v4178_v16 = vpop.f32.mrb[57].mxu0  ;;  %v2608_v29 = vpop.f32.mrb[54].mxu1 }
 0x63b   : > { %v2656_v31 = vpop.f32.mrb[58].mxu0  ;;  %v4173_v19 = vpop.f32.mrb[55].mxu1  ;;  %v4467_v29 = vld [vmem:[#allocation2] sm:$0xff] }
 0x63c   : > { %4355 = vrot.lane.b32.xlu1 %v4354_v7, %s4541_s21  ;;  %v4179_v20 = vpop.f32.mrb[59].mxu0 }
 0x66d   : > { %v2701_v34 = vpop.f32.mrb[56].mxu1 }
 0x66e   : > { %v2749_v35 = vpop.f32.mrb[60].mxu0  ;;  %v4184_v36 = vpop.f32.mrb[57].mxu1 }
 0x66f   : > { %v4359_v50 = vpack.i.bf16 %v2749_v35, %v2701_v34  ;;  %v4190_v27 = vpop.f32.mrb[61].mxu0  ;;  %v2704_v23 = vpop.f32.mrb[58].mxu1  ;;  %v4469_v34 = vld [vmem:[#allocation2 + $0x10] sm:$0xff] }
 0x670   : > { %v2752_v52 = vpop.f32.mrb[62].mxu0  ;;  %v4185_v60 = vpop.f32.mrb[59].mxu1  ;;  %v4470_v27 = vld [vmem:[#allocation2 + $0x18] sm:$0xff] }
 0x671   : > { %4360 = vrot.lane.b32.xlu0 %v4359_v50, %s4542_s16  ;;  %v4191_v61 = vpop.f32.mrb[63].mxu0 }
 0x675   : > { %v2797_v54 = vpop.f32.mrb[60].mxu1 }
 0x676   : > { %v2845_v43 = vpop.f32.mrb[64].mxu0  ;;  %v4196_v45 = vpop.f32.mrb[61].mxu1 }
 0x677   : > { %v4364_v5 = vpack.i.bf16 %v2845_v43, %v2797_v54  ;;  %v4202_v37 = vpop.f32.mrb[65].mxu0  ;;  %v2800_v55 = vpop.f32.mrb[62].mxu1 }
 0x678   : > { %v2848_v46 = vpop.f32.mrb[66].mxu0  ;;  %v4197_v48 = vpop.f32.mrb[63].mxu1 }
 0x679   : > { %v4203_v13 = vpop.f32.mrb[67].mxu0  ;;  %4365 = vrot.lane.b32.xlu1 %v4364_v5, %s4542_s16 }
 0x696   : > { %v4341_v25 = vpop.permute.xlu0 %4340 }
 0x697   : > { %v4343_v53 = vunpack.i.h.bf16 %v4341_v25  ;;  %v4342_v56 = vunpack.i.l.bf16 %v4341_v25 }
 0x699   : > { %v2900_v57 = vsel %vm1108_vm3, %v5270_v28, %v4343_v53  ;;  %v2899_v62 = vsel %vm1108_vm3, %v5272_v39, %v4342_v56 }
 0x69e   : > { %v4346_v11 = vpop.permute.xlu1 %4345 }
 0x69f   : > { %v4348_v3 = vunpack.i.h.bf16 %v4346_v11  ;;  %v4347_v9 = vunpack.i.l.bf16 %v4346_v11 }
 0x6a1   : > { %v2902_v8 = vsel %vm1108_vm3, %v5274_v22, %v4348_v3  ;;  %v2901_v40 = vsel %vm1108_vm3, %v5276_v49, %v4347_v9  ;;  %v3872_v22 = vld [vmem:[%s5499_s19] ss:$0 sm:$0xff] }
 0x6a6   : > { %v4351_v41 = vpop.permute.xlu0 %4350 }
 0x6a7   : > { %v4353_v10 = vunpack.i.h.bf16 %v4351_v41  ;;  %v4352_v26 = vunpack.i.l.bf16 %v4351_v41 }
 0x6a9   : > { %v2904_v1 = vsel %vm2903_vm5, %v2899_v62, %v4352_v26  ;;  %v2905_v17 = vsel %vm2903_vm5, %v2900_v57, %v4353_v10  ;;  %v4373_v62 = vld [vmem:[%s4708_s30] sm:$0xff]  }
 0x6aa   : > { %4212 = vmatprep.subr.bf16.mxu0 %v4373_v62 }
 0x6ab   : > { %4213 = vmatpush3.bf16.msra.mxu0 %v4373_v62 }
 0x6ae   : > { %v4356_v18 = vpop.permute.xlu1 %4355 }
 0x6af   : > { %v4358_v21 = vunpack.i.h.bf16 %v4356_v18  ;;  %v4357_v28 = vunpack.i.l.bf16 %v4356_v18 }
 0x6b1   : > { %v2907_v4 = vsel %vm2903_vm5, %v2902_v8, %v4358_v21  ;;  %v2906_v58 = vsel %vm2903_vm5, %v2901_v40, %v4357_v28  ;;  %v3877_v40 = vld [vmem:[%s5500_s28] ss:$0 sm:$0xff] }
 0x6e3   : > { %v4361_v24 = vpop.permute.xlu0 %4360 }
 0x6e4   : > { %v4363_v63 = vunpack.i.h.bf16 %v4361_v24  ;;  %v4362_v0 = vunpack.i.l.bf16 %v4361_v24 }
 0x6e6   : > { %v2909_v30 = vsel %vm2908_vm6, %v2904_v1, %v4362_v0  ;;  %v2910_v2 = vsel %vm2908_vm6, %v2905_v17, %v4363_v63  ;;  %v4374_v63 = vld [vmem:[%s4708_s30 + $0x8] sm:$0xff]  }
 0x6e7   : > { %v2913_v47 = vpack.c.bf16 %v2910_v2, %v2909_v30  ;;  %4214 = vmatprep.subr.bf16.mxu0 %v4374_v63 }
 0x6e8   : > { %4215 = vmatpush3.bf16.msra.mxu0 %v4374_v63 }
 0x6e9   : > { %4208 = vmatprep.mubr.msk.bf16.mxu1 %vm969_vm1, %v2913_v47 }
 0x6eb   : > { %v4366_v39 = vpop.permute.xlu1 %4365 }
 0x6ec   : > { %v4368_v44 = vunpack.i.h.bf16 %v4366_v39  ;;  %v4367_v51 = vunpack.i.l.bf16 %v4366_v39 }
 0x6ee   : > { %v2912_v59 = vsel %vm2908_vm6, %v2907_v4, %v4368_v44  ;;  %v2911_v12 = vsel %vm2908_vm6, %v2906_v58, %v4367_v51 }
 0x6ef   : > { %v2914_v14 = vpack.c.bf16 %v2912_v59, %v2911_v12  ;;  %v3878_v12 = vld [vmem:[%s5501_s29] ss:$0 sm:$0xff] }
 0x6f1   : > { %4209 = vmatmul.mubr.msk.bf16.vlgmr.msra.gmra.mrb[64].mxu1 %vm969_vm1, %v2914_v14 }
 0x7c4   : > { %v4210_v15 = vpop.f32.mrb[64].mxu1 }
 0x7c5   : > { %v2978_v49 = vpop.f32.mrb[65].mxu1  ;;  %v2987_v6 = vadd.f32 %v4210_v15, %v3872_v22 }
 0x7c6   : > { %v2979_v38 = vadd.f32 %v3872_v22, %v2978_v49  ;;  %v4211_v42 = vpop.f32.mrb[66].mxu1 }
 0x7c7   : > { %v2981_v7 = vpop.f32.mrb[67].mxu1  ;;  %v2990_v19 = vadd.f32 %v4211_v42, %v3872_v22  ;;  %v2995_v35 = vadd.f32 %v4469_v34, %v2987_v6  ;;  %v4378_v34 = vld [vmem:[%s4718_s23 + $0x18] sm:$0xff]  }
 0x7c8   : > { %v2982_v16 = vadd.f32 %v3872_v22, %v2981_v7  ;;  %v2993_v31 = vadd.f32 %v4467_v29, %v2979_v38 }
 0x7c9   : > { %v3005_v50 = vsel %vm969_vm1, %v2995_v35, 0.0  ;;  %v2996_v23 = vadd.f32 %v4470_v27, %v2990_v19 }
 0x7ca   : > { %v2999_v20 = vsel %vm969_vm1, %v2993_v31, 0.0  ;;  %v2994_v33 = vadd.f32 %v4468_v32, %v2982_v16  ;;  %v4376_v32 = vld [vmem:[%s4718_s23 + $0x8] sm:$0xff]  }
 0x7cb   : > { %3000 = vadd.xlane.f32.xlu0 %v2999_v20  ;;  %v3008_v52 = vsel %vm969_vm1, %v2996_v23, 0.0  ;;  %v4375_v20 = vld [vmem:[%s4718_s23] sm:$0xff]  }
 0x7cc   : > { %v3002_v36 = vsel %vm969_vm1, %v2994_v33, 0.0  ;;  %4220 = vmatprep.subr.bf16.mxu1 %v4375_v20 }
 0x7cd   : > { %3003 = vadd.xlane.f32.xlu1 %v3002_v36  ;;  %4221 = vmatpush3.bf16.msra.mxu1 %v4375_v20 }
 0x7ce   : > { %4222 = vmatprep.subr.bf16.mxu1 %v4376_v32 }
 0x7cf   : > { %3006 = vadd.xlane.f32.xlu0 %v3005_v50 }
 0x7d1   : > { %4223 = vmatpush3.bf16.msra.mxu1 %v4376_v32 }
 0x7d3   : > { %3009 = vadd.xlane.f32.xlu0 %v3008_v52 }
 0x858   : > { %v3001_v60 = vpop.xlane.xlu0 %3000 }
 0x859   : > { %v3012_v61 = vmul.f32 0.03125, %v3001_v60 }
 0x85a   : > { %v3004_v54 = vpop.xlane.xlu1 %3003 }
 0x85b   : > { %v3016_v43 = vsub.f32 %v2993_v31, %v3012_v61  ;;  %v3013_v45 = vmul.f32 0.03125, %v3004_v54 }
 0x85c   : > { %v3007_v5 = vpop.xlane.xlu0 %3006 }
 0x85d   : > { %v3017_v37 = vsub.f32 %v2994_v33, %v3013_v45  ;;  %v3014_v55 = vmul.f32 0.03125, %v3007_v5  ;;  %v3020_v46 = vmul.f32 %v3016_v43, %v3016_v43  ;;  %v4377_v33 = vld [vmem:[%s4718_s23 + $0x10] sm:$0xff]  }
 0x85e   : > { %4224 = vmatprep.subr.bf16.mxu1 %v4377_v33 }
 0x85f   : > { %v3018_v48 = vsub.f32 %v2995_v35, %v3014_v55  ;;  %v3024_v13 = vsel %vm969_vm1, %v3020_v46, 0.0  ;;  %v3021_v25 = vmul.f32 %v3017_v37, %v3017_v37  ;;  %4225 = vmatpush3.bf16.msra.mxu1 %v4377_v33  ;;  %v3879_v35 = vld [vmem:[%s831_s6] ss:$0 sm:$0xff] }
 0x860   : > { %3025 = vadd.xlane.f32.xlu1 %v3024_v13  ;;  %v3010_v41 = vpop.xlane.xlu0 %3009  ;;  %4226 = vmatprep.subr.bf16.mxu1 %v4378_v34 }
 0x861   : > { %v3015_v53 = vmul.f32 0.03125, %v3010_v41  ;;  %v3027_v56 = vsel %vm969_vm1, %v3021_v25, 0.0  ;;  %v3022_v10 = vmul.f32 %v3018_v48, %v3018_v48 }
 0x862   : > { %3028 = vadd.xlane.f32.xlu0 %v3027_v56 }
 0x863   : > { %v3019_v26 = vsub.f32 %v2996_v23, %v3015_v53  ;;  %v3030_v11 = vsel %vm969_vm1, %v3022_v10, 0.0  ;;  %4227 = vmatpush3.bf16.msra.mxu1 %v4378_v34 }
 0x864   : > { %3031 = vadd.xlane.f32.xlu1 %v3030_v11 }
 0x865   : > { %v3023_v24 = vmul.f32 %v3019_v26, %v3019_v26 }
 0x867   : > { %v3033_v57 = vsel %vm969_vm1, %v3023_v24, 0.0 }
 0x868   : > { %3034 = vadd.xlane.f32.xlu0 %v3033_v57 }
 0x8ed   : > { %v3026_v0 = vpop.xlane.xlu1 %3025 }
 0x8ee   : > { %v3036_v1 = vmul.f32 0.03125, %v3026_v0 }
 0x8ef   : > { %v3029_v17 = vpop.xlane.xlu0 %3028 }
 0x8f0   : > { %v3040_v18 = vadd.f32 1e-12, %v3036_v1  ;;  %v3037_v30 = vmul.f32 0.03125, %v3029_v17 }
 0x8f1   : > { %v3032_v2 = vpop.xlane.xlu1 %3031 }
 0x8f2   : > { %4443 = vrsqrt.f32 %v3040_v18  ;;  %v3041_v47 = vadd.f32 1e-12, %v3037_v30  ;;  %v3038_v3 = vmul.f32 0.03125, %v3032_v2 }
 0x8f4   : > { %4445 = vrsqrt.f32 %v3041_v47  ;;  %v3042_v9 = vadd.f32 1e-12, %v3038_v3 }
 0x8f5   : > { %v3035_v21 = vpop.xlane.xlu0 %3034 }
 0x8f6   : > { %4447 = vrsqrt.f32 %v3042_v9  ;;  %v3039_v28 = vmul.f32 0.03125, %v3035_v21 }
 0x8f8   : > { %v3043_v39 = vadd.f32 1e-12, %v3039_v28 }
 0x8fa   : > { %4449 = vrsqrt.f32 %v3043_v39 }
 0x8fc   : > { %v4444_v8 = vpop.eup %4443 }
 0x8fd   : > { %v3048_v44 = vmul.f32 %v4444_v8, %v3016_v43 }
 0x8fe   : > { %v4446_v51 = vpop.eup %4445 }
 0x8ff   : > { %v3049_v4 = vmul.f32 %v4446_v51, %v3017_v37  ;;  %v3058_v58 = vmul.f32 %v3877_v40, %v3048_v44 }
 0x900   : > { %v4448_v59 = vpop.eup %4447 }
 0x901   : > { %v3050_v14 = vmul.f32 %v4448_v59, %v3018_v48  ;;  %v3059_v22 = vmul.f32 %v3877_v40, %v3049_v4  ;;  %v5325_v15 = vadd.f32 %v3878_v12, %v3058_v58 }
 0x903   : > { %v5327_v49 = vadd.f32 %v3878_v12, %v3059_v22  ;;  %v3060_v38 = vmul.f32 %v3877_v40, %v3050_v14 }
 0x904   : > { %v4450_v6 = vpop.eup %4449 }
 0x905   : > { %v3051_v42 = vmul.f32 %v4450_v6, %v3019_v26  ;;  %v3072_v7 = vpack.c.bf16 %v5327_v49, %v5325_v15  ;;  %v5332_v29 = vadd.f32 %v3878_v12, %v3060_v38 }
 0x907   : > { %v3061_v16 = vmul.f32 %v3877_v40, %v3051_v42  ;;  %4216 = vmatprep.mubr.msk.bf16.mxu0 %vm969_vm1, %v3072_v7 }
 0x909   : > { %v5334_v31 = vadd.f32 %v3878_v12, %v3061_v16  ;;  %v3884_v12 = vld [vmem:[%s839_s26] ss:$0 sm:$0xff] }
 0x90b   : > { %v3073_v19 = vpack.c.bf16 %v5334_v31, %v5332_v29 }
 0x90d   : > { %4217 = vmatmul.mubr.msk.bf16.vlgmr.msra.gmra.mrb[68].mxu0 %vm969_vm1, %v3073_v19 }
 0x9e0   : > { %v4218_v36 = vpop.f32.mrb[68].mxu0 }
 0x9e1   : > { %v3146_v50 = vadd.f32 %v4218_v36, %v3879_v35  ;;  %v3137_v27 = vpop.f32.mrb[69].mxu0 }
 0x9e2   : > { %v3138_v23 = vadd.f32 %v3879_v35, %v3137_v27  ;;  %v4219_v52 = vpop.f32.mrb[70].mxu0 }
 0x9e3   : > { %v3158_v60 = vmul.f32 0.044715, %v3146_v50  ;;  %v3149_v61 = vadd.f32 %v4219_v52, %v3879_v35  ;;  %v3140_v54 = vpop.f32.mrb[71].mxu0  ;;  %v3154_v3 = vmul.f32 0.5, %v3146_v50 }
 0x9e4   : > { %v3156_v43 = vmul.f32 0.044715, %v3138_v23  ;;  %v3141_v45 = vadd.f32 %v3879_v35, %v3140_v54  ;;  %v3152_v28 = vmul.f32 0.5, %v3138_v23 }
 0x9e5   : > { %v3162_v5 = vmul.f32 %v3158_v60, %v3146_v50  ;;  %v3159_v37 = vmul.f32 0.044715, %v3149_v61  ;;  %v3155_v9 = vmul.f32 0.5, %v3149_v61 }
 0x9e6   : > { %v3160_v55 = vmul.f32 %v3156_v43, %v3138_v23  ;;  %v3157_v46 = vmul.f32 0.044715, %v3141_v45  ;;  %v3153_v39 = vmul.f32 0.5, %v3141_v45 }
 0x9e7   : > { %v3166_v48 = vmul.f32 %v3162_v5, %v3146_v50  ;;  %v3163_v13 = vmul.f32 %v3159_v37, %v3149_v61 }
 0x9e8   : > { %v3164_v25 = vmul.f32 %v3160_v55, %v3138_v23  ;;  %v3161_v41 = vmul.f32 %v3157_v46, %v3141_v45 }
 0x9e9   : > { %v3170_v53 = vadd.f32 %v3166_v48, %v3146_v50  ;;  %v3167_v56 = vmul.f32 %v3163_v13, %v3149_v61 }
 0x9ea   : > { %v3168_v10 = vadd.f32 %v3164_v25, %v3138_v23  ;;  %v3165_v26 = vmul.f32 %v3161_v41, %v3141_v45 }
 0x9eb   : > { %v3174_v11 = vmul.f32 0.7978846, %v3170_v53  ;;  %v3171_v24 = vadd.f32 %v3167_v56, %v3149_v61 }
 0x9ec   : > { %v3172_v57 = vmul.f32 0.7978846, %v3168_v10  ;;  %v3169_v62 = vadd.f32 %v3165_v26, %v3141_v45 }
 0x9ed   : > { %4451 = vtanh.f32 %v3174_v11  ;;  %v3175_v63 = vmul.f32 0.7978846, %v3171_v24 }
 0x9ee   : > { %4453 = vtanh.f32 %v3172_v57  ;;  %v3173_v0 = vmul.f32 0.7978846, %v3169_v62 }
 0x9ef   : > { %4455 = vtanh.f32 %v3175_v63 }
 0x9f0   : > { %4457 = vtanh.f32 %v3173_v0 }
 0x9f7   : > { %v4452_v1 = vpop.eup %4451 }
 0x9f8   : > { %v4454_v17 = vpop.eup %4453  ;;  %v3182_v18 = vadd.f32 1.0, %v4452_v1 }
 0x9f9   : > { %v4456_v30 = vpop.eup %4455  ;;  %v3180_v2 = vadd.f32 1.0, %v4454_v17 }
 0x9fa   : > { %v4458_v47 = vpop.eup %4457  ;;  %v3183_v21 = vadd.f32 1.0, %v4456_v30  ;;  %v3186_v40 = vmul.f32 %v3182_v18, %v3154_v3 }
 0x9fb   : > { %v3181_v8 = vadd.f32 1.0, %v4458_v47  ;;  %v3184_v51 = vmul.f32 %v3180_v2, %v3152_v28  ;;  %v3891_v2 = vld [vmem:[%s842_s4] ss:$0 sm:$0xff]  ;;  %s5502_s4 = sld [smem:[#allocation15_spill]] (!%p3893_p6) }
 0x9fc   : > { %v3187_v44 = vmul.f32 %v3183_v21, %v3155_v9  ;;  %v3892_v9 = vld [vmem:[%s845_s18] ss:$0 sm:$0xff] }
 0x9fd   : > { %v3185_v4 = vmul.f32 %v3181_v8, %v3153_v39 }
 0x9fe   : > { %v3189_v58 = vpack.c.bf16 %v3187_v44, %v3186_v40 }
 0x9ff   : > { %v3188_v59 = vpack.c.bf16 %v3185_v4, %v3184_v51 }
 0xa01   : > { %4228 = vmatprep.mubr.msk.bf16.mxu1 %vm3229_vm7, %v3188_v59 }
 0xa02   : > { %4229 = vmatmul.mubr.msk.bf16.vlgmr.msra.gmra.mrb[68].mxu1 %vm3229_vm7, %v3189_v58 }
 0xad5   : > { %v4230_v14 = vpop.f32.mrb[68].mxu1 }
 0xad6   : > { %v3270_v22 = vpop.f32.mrb[69].mxu1  ;;  %v3279_v6 = vadd.f32 %v4230_v14, %v3884_v12 }
 0xad7   : > { %v3271_v38 = vadd.f32 %v3884_v12, %v3270_v22  ;;  %v4231_v42 = vpop.f32.mrb[70].mxu1 }
 0xad8   : > { %v3273_v7 = vpop.f32.mrb[71].mxu1  ;;  %v3282_v16 = vadd.f32 %v4231_v42, %v3884_v12  ;;  %v3287_v34 = vadd.f32 %v3279_v6, %v5332_v29  ;;  %v4471_v6 = vld [vmem:[%s5502_s4] sm:$0xff] (!%p3893_p6)  }
 0xad9   : > { %v3274_v19 = vadd.f32 %v3884_v12, %v3273_v7  ;;  %v3285_v20 = vadd.f32 %v3271_v38, %v5325_v15 }
 0xada   : > { %v3288_v36 = vadd.f32 %v3282_v16, %v5334_v31  ;;  %v3297_v50 = vsel %vm969_vm1, %v3287_v34, 0.0  ;;  %v4543_v16 = vmov (!%p3893_p6), 0.0  }
 0xadb   : > { %v3291_v32 = vsel %vm969_vm1, %v3285_v20, 0.0  ;;  %v3286_v33 = vadd.f32 %v3274_v19, %v5327_v49  ;;  %4232 = vmatprep.subr.bf16.mxu0 (!%p3893_p6), %v4543_v16  ;;  %4240 = vmatprep.subr.bf16.mxu1 (!%p3893_p6), %v4543_v16 }
 0xadc   : > { %3292 = vadd.xlane.f32.xlu1 %v3291_v32  ;;  %v3300_v27 = vsel %vm969_vm1, %v3288_v36, 0.0  ;;  %4233 = vmatpush3.bf16.msra.mxu0 (!%p3893_p6), %v4471_v6 }
 0xadd   : > { %v3294_v35 = vsel %vm969_vm1, %v3286_v33, 0.0  ;;  %4236 = vmatprep.mubr.msk.bf16.mxu0 (!%p3893_p6), %vm4544_vm8, %v4543_v16  ;;  %4234 = vmatprep.subr.bf16.mxu0 (!%p3893_p6), %v4543_v16 }
 0xade   : > { %3295 = vadd.xlane.f32.xlu0 %v3294_v35  ;;  %4244 = vmatprep.mubr.msk.bf16.mxu1 (!%p3893_p6), %vm4544_vm8, %v4543_v16 }
 0xae0   : > { %3298 = vadd.xlane.f32.xlu1 %v3297_v50 }
 0xae2   : > { %3301 = vadd.xlane.f32.xlu0 %v3300_v27 }
 0xb69   : > { %v3293_v23 = vpop.xlane.xlu1 %3292 }
 0xb6a   : > { %v3303_v15 = vmul.f32 0.03125, %v3293_v23 }
 0xb6b   : > { %v3296_v52 = vpop.xlane.xlu0 %3295 }
 0xb6c   : > { %v3307_v60 = vsub.f32 %v3285_v20, %v3303_v15  ;;  %v3304_v61 = vmul.f32 0.03125, %v3296_v52  ;;  %v4472_v20 = vld [vmem:[%s5502_s4 + $0x8] sm:$0xff] (!%p3893_p6)  }
 0xb6d   : > { %v3299_v49 = vpop.xlane.xlu1 %3298  ;;  %4235 = vmatpush3.bf16.msra.mxu0 (!%p3893_p6), %v4472_v20 }
 0xb6e   : > { %v3308_v54 = vsub.f32 %v3286_v33, %v3304_v61  ;;  %v3305_v29 = vmul.f32 0.03125, %v3299_v49  ;;  %v3311_v43 = vmul.f32 %v3307_v60, %v3307_v60  ;;  %4248 = vmatprep.subr.bf16.mxu0 (!%p3893_p6), %v4543_v16  ;;  %v4473_v61 = vld [vmem:[%s5503_s27] sm:$0xff] (!%p3893_p6)   ;;  %v4474_v49 = vld [vmem:[%s5503_s27 + $0x10] sm:$0xff] (!%p3893_p6)  }
 0xb6f   : > { %v3302_v45 = vpop.xlane.xlu0 %3301  ;;  %4241 = vmatpush3.bf16.msra.mxu1 (!%p3893_p6), %v4474_v49 }
 0xb70   : > { %v3309_v5 = vsub.f32 %v3287_v34, %v3305_v29  ;;  %v3306_v37 = vmul.f32 0.03125, %v3302_v45  ;;  %v3315_v31 = vsel %vm969_vm1, %v3311_v43, 0.0  ;;  %v3312_v55 = vmul.f32 %v3308_v54, %v3308_v54  ;;  %4242 = vmatprep.subr.bf16.mxu1 (!%p3893_p6), %v4543_v16  ;;  %v4476_v29 = vld [vmem:[%s5503_s27 + $0x18] sm:$0xff] (!%p3893_p6)   ;;  %v3894_v43 = vld [vmem:[%s5504_s22] ss:$0 sm:$0xff] (!%p3893_p6) }
 0xb71   : > { %3316 = vadd.xlane.f32.xlu1 %v3315_v31 }
 0xb72   : > { %v3310_v46 = vsub.f32 %v3288_v36, %v3306_v37  ;;  %v3318_v48 = vsel %vm969_vm1, %v3312_v55, 0.0  ;;  %v3313_v13 = vmul.f32 %v3309_v5, %v3309_v5 }
 0xb73   : > { %3319 = vadd.xlane.f32.xlu0 %v3318_v48  ;;  %4243 = vmatpush3.bf16.msra.mxu1 (!%p3893_p6), %v4476_v29 }
 0xb74   : > { %v3321_v25 = vsel %vm969_vm1, %v3313_v13, 0.0  ;;  %v3314_v41 = vmul.f32 %v3310_v46, %v3310_v46 }
 0xb75   : > { %3322 = vadd.xlane.f32.xlu1 %v3321_v25  ;;  %v4545_v25 = vmov (!%p3893_p6), 1966171168  }
 0xb76   : > { %v3324_v53 = vsel %vm969_vm1, %v3314_v41, 0.0  ;;  %v3591_v41 = vunpack.c.l.s4 (!%p3893_p6), %v4545_v25 }
 0xb77   : > { %3325 = vadd.xlane.f32.xlu0 %v3324_v53  ;;  %v3593_v53 = vlaneseq (!%p3893_p6) }
 0xbfe   : > { %v3317_v56 = vpop.xlane.xlu1 %3316 }
 0xbff   : > { %v3327_v10 = vmul.f32 0.03125, %v3317_v56  ;;  %v3592_v56 = vunpack.c.0.s8 (!%p3893_p6), %v3591_v41 }
 0xc00   : > { %v3320_v26 = vpop.xlane.xlu0 %3319 }
 0xc01   : > { %v3331_v11 = vadd.f32 1e-12, %v3327_v10  ;;  %v3328_v24 = vmul.f32 0.03125, %v3320_v26  ;;  %v3594_v10 = vshrl.u32 (!%p3893_p6), %v3593_v53, 7 }
 0xc02   : > { %v3323_v57 = vpop.xlane.xlu1 %3322 }
 0xc03   : > { %4459 = vrsqrt.f32 %v3331_v11  ;;  %v3332_v62 = vadd.f32 1e-12, %v3328_v24  ;;  %v3329_v63 = vmul.f32 0.03125, %v3323_v57  ;;  %v3904_v57 = vld [vmem:[%s5505_s25] ss:$0 sm:$0xff] (!%p3893_p6) }
 0xc04   : > { %v3326_v0 = vpop.xlane.xlu0 %3325 }
 0xc05   : > { %4461 = vrsqrt.f32 %v3332_v62  ;;  %v3333_v1 = vadd.f32 1e-12, %v3329_v63  ;;  %v3330_v17 = vmul.f32 0.03125, %v3326_v0  ;;  %v3595_v0 = vsub.s32 (!%p3893_p6), %v3592_v56, %v3594_v10 }
 0xc07   : > { %4463 = vrsqrt.f32 %v3333_v1  ;;  %v3334_v18 = vadd.f32 1e-12, %v3330_v17 }
 0xc09   : > { %4465 = vrsqrt.f32 %v3334_v18 }
 0xc0d   : > { %v4460_v30 = vpop.eup %4459 }
 0xc0e   : > { %v3339_v47 = vmul.f32 %v4460_v30, %v3307_v60 }
 0xc0f   : > { %v4462_v3 = vpop.eup %4461 }
 0xc10   : > { %v3349_v21 = vmul.f32 %v3891_v2, %v3339_v47  ;;  %v3340_v28 = vmul.f32 %v4462_v3, %v3308_v54  ;;  %v4475_v54 = vld [vmem:[%s5503_s27 + $0x8] sm:$0xff] (!%p3893_p6)  }
 0xc11   : > { %v4464_v39 = vpop.eup %4463 }
 0xc12   : > { %v3359_v8 = vadd.f32 %v3892_v9, %v3349_v21  ;;  %v3350_v40 = vmul.f32 %v3891_v2, %v3340_v28  ;;  %v3341_v44 = vmul.f32 %v4464_v39, %v3309_v5 }
 0xc13   : > { %v4466_v51 = vpop.eup %4465 }
 0xc14   : > { %3363 = vst.msk [vmem:[#allocation2] sm:$0xff] %vm969_vm1, %v3359_v8  ;;  %v3360_v4 = vadd.f32 %v3892_v9, %v3350_v40  ;;  %v3351_v58 = vmul.f32 %v3891_v2, %v3341_v44  ;;  %v3342_v59 = vmul.f32 %v4466_v51, %v3310_v46  ;;  %3370 = sbr.rel (%p3893_p6) target bundleno = 3559 (0xde7), region = 108  ;;  %v3371_v38 = vpack.c.bf16 (!%p3893_p6), %v3359_v8, %v3359_v8 }
 0xc16   : > { %3364 = vst.msk [vmem:[#allocation2 + $0x8] sm:$0xff] %vm969_vm1, %v3360_v4  ;;  %v3361_v12 = vadd.f32 %v3892_v9, %v3351_v58  ;;  %v3352_v14 = vmul.f32 %v3891_v2, %v3342_v59  ;;  %v3372_v42 = vpack.c.bf16 (!%p3893_p6), %v3360_v4, %v3360_v4  ;;  %v3390_v32 = vunpack.c.l.b16 (!%p3893_p6), %v3371_v38 }
 0xc18   : > { %3365 = vst.msk [vmem:[#allocation2 + $0x10] sm:$0xff] %vm969_vm1, %v3361_v12  ;;  %v3362_v22 = vadd.f32 %v3892_v9, %v3352_v14  ;;  %v3373_v7 = vpack.c.bf16 (!%p3893_p6), %v3361_v12, %v3361_v12  ;;  %v3391_v33 = vunpack.c.l.b16 (!%p3893_p6), %v3372_v42 }
 0xc1a   : > { %3366 = vst.msk [vmem:[#allocation2 + $0x18] sm:$0xff] %vm969_vm1, %v3362_v22  ;;  %v3374_v19 = vpack.c.bf16 (!%p3893_p6), %v3362_v22, %v3362_v22  ;;  %v3392_v34 = vunpack.c.l.b16 (!%p3893_p6), %v3373_v7  ;;  %v3394_v36 = vrot.slane (!%p3893_p6), %v3391_v33, 7 }
 0xc1c   : > { %v3393_v35 = vunpack.c.l.b16 %v3374_v19  ;;  %v3397_v50 = vrot.slane %v3392_v34, 6  ;;  %v3396_v23 = vsel %vm3395_vm9, %v3394_v36, %v3390_v32 }
 0xc1e   : > { %v3400_v27 = vrot.slane %v3393_v35, 5  ;;  %v3399_v15 = vsel %vm3398_vm10, %v3397_v50, %v3396_v23 }
 0xc20   : > { %v3402_v52 = vsel %vm3401_vm11, %v3400_v27, %v3399_v15 }
 0xc21   : > { %v3403_v60 = vpack.c.b16 %v3402_v52, %v3402_v52 }
 0xc23   : > { %4237 = vmatmul.mubr.msk.bf16.vlgmr.msra.gmra.mrb[0].mxu0 %vm969_vm1, %v3403_v60 }
 0xc24   : > { %4252 = vmatprep.mubr.msk.bf16.mxu0 %vm4544_vm8, %v4543_v16  ;;  %4249 = vmatpush3.bf16.msra.mxu0 %v4473_v61 }
 0xc25   : > { %4250 = vmatprep.subr.bf16.mxu0 %v4543_v16 }
 0xc28   : > { %4251 = vmatpush3.bf16.msra.mxu0 %v4475_v54 }
 0xcf6   : > { %v3453_v45 = vpop.f32.mrb[0].mxu0 }
 0xcf7   : > { %v3454_v5 = vadd.f32 %v3894_v43, %v3453_v45  ;;  %v4238_v37 = vpop.f32.mrb[1].mxu0 }
 0xcf8   : > { %v3456_v31 = vpop.f32.mrb[2].mxu0 }
 0xcf9   : > { %4477 = vtanh.f32 %v3454_v5  ;;  %v4239_v55 = vpop.f32.mrb[3].mxu0 }
 0xd03   : > { %v4478_v46 = vpop.eup %4477 }
 0xd04   : > { %v3468_v48 = vpack.c.bf16 %v4478_v46, %v4478_v46 }
 0xd06   : > { %4253 = vmatmul.mubr.msk.bf16.vlgmr.msra.gmra.mrb[4].mxu0 %vm969_vm1, %v3468_v48  ;;  %v3470_v13 = vrot.slane %v3468_v48, 1 }
 0xd08   : > { %4245 = vmatmul.mubr.msk.bf16.vlgmr.msra.gmra.mrb[0].mxu1 %vm969_vm1, %v3470_v13 }
 0xdd9   : > { %v3575_v26 = vpop.f32.mrb[4].mxu0 }
 0xdda   : > { %v4254_v11 = vpop.f32.mrb[5].mxu0 }
 0xddb   : > { %v3520_v24 = vpop.f32.mrb[0].mxu1  ;;  %v3578_v62 = vpop.f32.mrb[6].mxu0 }
 0xddc   : > { %v3576_v63 = vadd.f32 %v3575_v26, %v3520_v24  ;;  %v4246_v1 = vpop.f32.mrb[1].mxu1  ;;  %v4255_v17 = vpop.f32.mrb[7].mxu0 }
 0xddd   : > { %v3523_v18 = vpop.f32.mrb[2].mxu1 }
 0xdde   : > { %v3588_v30 = vadd.f32 %v3904_v57, %v3576_v63  ;;  %v4247_v2 = vpop.f32.mrb[3].mxu1 }
 0xde0   : > { %v3596_v47 = vrot.slane %v3588_v30, %v3595_v0 }
 0xde2   : > { %v3597_v3 = vcombine.high %v3596_v47, %v3596_v47  ;;  %v3604_v9 = vrot.slane %v3596_v47, %v3595_v0 }
 0xde4   : > { %v3611_v21 = vrot.slane %v3597_v3, %v3595_v0  ;;  %3615 = vst.msk [vmem:[#allocation3] sm:$0x1] %vm3614_vm12, %v3604_v9 }
 0xde6   : > { %3616 = vst.msk [vmem:[#allocation3 + $0x1] sm:$0x1] %vm3614_vm12, %v3611_v21 }
 0xde7 PF: > { %s5506_s30 = sld [smem:[#allocation7_spill]]  ;;  %s4546_s28 = smov [#allocation3]  }
 0xde8   : > { %s3626_s3 = sshll.u32 %s4546_s28, 4  ;;  %s3627_s3 = int_to_ptr.vmem [resolvable:$true] %s3626_s3 }
 0xde9   : > { %s4479_s29 = scalar_lea.vmem %s3627_s3, 32  ;;  %p4486_p11 = scmp.lt.s32.totalorder %s3627_s3, %s3627_s3 }
 0xdea   : > { %p4480_p8 = scmp.ne.s32.totalorder %s3627_s3, %s4479_s29  ;;  %p4487_p12 = scmp.lt.s32.totalorder %s4479_s29, %s4479_s29 }
 0xdec   : > { %p4488_p13 = por %p4487_p12, %p4486_p11 }
 0xded   : > { %s5507_s0 = sadd.s32 4294967295, %s5506_s30  }
 0xdee   : > { %p5412_p7 = scmp.eq.s32.totalorder %s5507_s0, 1 }
 0xdf0   : > { %p4481_p9 = pnand %p4480_p8, %p5412_p7 }
 0xdf2   : > { %p4482_p10 = pneg %p4481_p9 }
 0xdf4   : > { %p4489_p0 = pnand %p4488_p13, %p4482_p10 }
 0xdf6   : > { %4492 = shalt.err (!%p4489_p0)
}
 0xdf7   : > { %s5509_s6 = sld [smem:[#allocation19_spill]] }
 0xdfd   : > { %s4493_s23 = scalar_lea.hbm %s5509_s6, 32 }
 0xdfe   : > { %p4494_p1 = scmp.ne.s32.totalorder %s5509_s6, %s4493_s23  ;;  %p4499_p4 = scmp.lt.u32.totalorder %s4493_s23, %s5509_s6 }
 0xe00   : > { %p4495_p2 = pnand %p4494_p1, %p5412_p7 }
 0xe02   : > { %p4496_p3 = pneg %p4495_p2 }
 0xe04   : > { %p4501_p5 = pnand %p4499_p4, %p4496_p3 }
 0xe06   : > { %4504 = shalt.err (!%p4501_p5)
}
 0xe07   : > { %s4547_s18 = smov 1  }
 0xe08   : > { %4257 = dma.vmem_to_hbm [thread:$0]  (%p5412_p7), %s3627_s3, 32, %s5509_s6, [#allocation4], %s4541_s21, %s4541_s21, %s4547_s18  }
 0xe09   : > { %4518 = dma.done.wait (%p5412_p7), [#allocation4], 32  }
 0xe0a   : > { %4520 = vsyncadd (%p5412_p7), [#allocation4], 4294967264 }
 0xe0b PF: > { %s5510_s0 = sld [smem:[#allocation7_spill]]  ;;  %s5511_s1 = sld [smem:[#allocation6_spill]] }
 0xe0c   : > { %s5512_s22 = sld [smem:[#allocation8_spill]] }
 0xe11   : > { %s31_s23 = sadd.s32 1, %s5510_s0  }
 0xe12   : > { %p28_p6 = scmp.ge.s32.totalorder %s31_s23, 4  }
 0xe14   :  { %30 = sbr.rel (!%p28_p6) target bundleno = 14 (0xe), region = 175 }
 0xe1b   :  { %3642 = vsyncpa [#allocation4], 1 }
 0xe1c   :  { %3644 = vsyncpa [#allocation4 + $0x1], 1 }

</bundles_post_ra>
